<compile_context>
chip_gen: v6e
topology: v6e:2x2x1
jax: 0.10.0
libtpu: 0.0.40
codegen_flags: <defaults>
</compile_context>

<pallas_src>
import numpy as np

import jax
import jax.numpy as jnp
from jax.experimental import pallas as pl
from jax.experimental.pallas import tpu as pltpu

EPS_BN = 1e-5

LAYERS = ("conv1", "conv2", "fc", "fc2", "dconv1", "dconv2",
          "fcr1", "fcr2", "fcr3", "fcr4")
N_LAYERS = len(LAYERS)


# ----------------------------------------------------------------------------
# Init-time lowering: conv / conv-transpose -> dense matrix over NCHW flatten
# ----------------------------------------------------------------------------
def conv2d_to_matrix(w, H, W, stride, pad):
    """PyTorch Conv2d weight (Cout,Cin,k,k) -> M with y_flat = x_flat @ M."""
    Cout, Cin, k, _ = w.shape
    Ho = (H + 2 * pad - k) // stride + 1
    Wo = (W + 2 * pad - k) // stride + 1
    M = np.zeros((Cin * H * W, Cout * Ho * Wo), np.float32)
    for co in range(Cout):
        for ci in range(Cin):
            for kh in range(k):
                for kw in range(k):
                    wv = float(w[co, ci, kh, kw])
                    for oh in range(Ho):
                        ih = oh * stride - pad + kh
                        if not (0 <= ih < H):
                            continue
                        for ow in range(Wo):
                            iw = ow * stride - pad + kw
                            if not (0 <= iw < W):
                                continue
                            M[ci * H * W + ih * W + iw,
                              co * Ho * Wo + oh * Wo + ow] = wv
    return M, Ho, Wo


def conv_transpose2d_to_matrix(w, H, W, stride, pad):
    """PyTorch ConvTranspose2d weight (Cin,Cout,k,k) -> M with y = x_flat @ M."""
    Cin, Cout, k, _ = w.shape
    Ho = (H - 1) * stride - 2 * pad + k
    Wo = (W - 1) * stride - 2 * pad + k
    M = np.zeros((Cin * H * W, Cout * Ho * Wo), np.float32)
    for ci in range(Cin):
        for co in range(Cout):
            for kh in range(k):
                for kw in range(k):
                    wv = float(w[ci, co, kh, kw])
                    for ih in range(H):
                        oh = ih * stride - pad + kh
                        if not (0 <= oh < Ho):
                            continue
                        for iw in range(W):
                            ow = iw * stride - pad + kw
                            if not (0 <= ow < Wo):
                                continue
                            M[ci * H * W + ih * W + iw,
                              co * Ho * Wo + oh * Wo + ow] += wv
    return M, Ho, Wo


# ----------------------------------------------------------------------------
# Pallas kernel: the whole forward, weights VMEM-resident
# ----------------------------------------------------------------------------
def _forward_kernel(*refs):
    x_ref = refs[0]
    lref = refs[1:1 + 2 * N_LAYERS]                       # (w, aux) per layer
    recon_ref, reward_ref = refs[1 + 2 * N_LAYERS:]

    def layer(h, idx, act):
        w = lref[2 * idx][...]                            # (K, N)
        a = lref[2 * idx + 1][...]                        # (3, N): bias/scale/shift
        z = jnp.dot(h, w, preferred_element_type=jnp.float32)
        z = z + a[0:1, :]                                 # conv/linear bias
        z = jnp.maximum(z, 0.0) if act == "relu" else jax.nn.sigmoid(z)
        return z * a[1:2, :] + a[2:3, :]                  # folded BatchNorm affine

    x = x_ref[...]
    # encoder: conv1->relu->bn1 ; conv2->relu->bn2 (dp1=id) ; fc->relu->bn3
    u1 = layer(x, 0, "relu")
    u2 = layer(u1, 1, "relu")
    emb = layer(u2, 2, "relu")
    # decoder: fc2->relu->bn12 ; dconv1->relu->bn22 (dp2=id) ; dconv2->sigmoid
    h = layer(emb, 3, "relu")
    d1 = layer(h, 4, "relu")
    recon_ref[...] = layer(d1, 5, "sigmoid")
    # reward head: fcr1..fcr3 relu+bn (dpr1=id) ; fcr4 -> sigmoid (normalize)
    h1 = layer(emb, 6, "relu")
    h2 = layer(h1, 7, "relu")
    h3 = layer(h2, 8, "relu")
    reward_ref[...] = layer(h3, 9, "sigmoid")


def forward(p, x, r):
    del r  # reward target is only used in the loss, not the forward pass
    B = x.shape[0]
    x_flat = x.reshape(B, -1).astype(jnp.float32)         # NCHW flatten (Cin=1)
    K_in = x_flat.shape[1]

    TB = B if B <= 128 else 128                           # batch tile (full batch here)
    grid = (pl.cdiv(B, TB),)

    ws = []
    in_specs = [pl.BlockSpec((TB, K_in), lambda i: (i, 0))]
    for name in LAYERS:
        w = p[name + "_w"]
        a = p[name + "_aux"]
        ws += [w, a]
        in_specs.append(pl.BlockSpec(w.shape, lambda i: (0, 0)))   # VMEM-resident
        in_specs.append(pl.BlockSpec(a.shape, lambda i: (0, 0)))

    recon_n = p["dconv2_w"].shape[1]
    reward_n = p["fcr4_w"].shape[1]                       # padded to 128 lanes

    recon_flat, reward_pad = pl.pallas_call(
        _forward_kernel,
        out_shape=(jax.ShapeDtypeStruct((B, recon_n), jnp.float32),
                   jax.ShapeDtypeStruct((B, reward_n), jnp.float32)),
        grid=grid,
        in_specs=in_specs,
        out_specs=(pl.BlockSpec((TB, recon_n), lambda i: (i, 0)),
                   pl.BlockSpec((TB, reward_n), lambda i: (i, 0))),
        compiler_params=pltpu.CompilerParams(
            dimension_semantics=("parallel",)),
    )(x_flat, *ws)

    recon = recon_flat.reshape(x.shape)                   # (B,1,H,W) reconstruction
    reward = reward_pad[:, :1]                            # un-pad the 1-wide head
    return recon, reward


# ----------------------------------------------------------------------------
# Parameter construction (deterministic; shapes follow the module __init__)
# ----------------------------------------------------------------------------
def init_params(key, *, capacity, latent_dims, input_size):
    k, stride, pad = 4, 2, 1
    c = capacity
    dim_1 = (input_size + 2 * pad - k) // stride + 1
    dim_2 = (dim_1 + 2 * pad - k) // stride + 1
    assert latent_dims == 2 * c, "flatten dim must match fc in_features"

    keys = iter(jax.random.split(key, 64))

    def w_(shape, s=0.1):
        return np.asarray(jax.random.normal(next(keys), shape, jnp.float32)) * s

    def bn_(n):  # inference-mode BatchNorm folded to scale/shift
        gamma = 0.5 + np.asarray(jax.random.uniform(next(keys), (n,), jnp.float32))
        beta = 0.1 * np.asarray(jax.random.normal(next(keys), (n,), jnp.float32))
        mean = 0.1 * np.asarray(jax.random.normal(next(keys), (n,), jnp.float32))
        var = 0.5 + np.asarray(jax.random.uniform(next(keys), (n,), jnp.float32))
        s = (gamma / np.sqrt(var + EPS_BN)).astype(np.float32)
        t = (beta - mean * s).astype(np.float32)
        return s, t

    def aux(bias, scale, shift):
        return jnp.asarray(np.stack([bias, scale, shift]).astype(np.float32))

    p = {}

    # ---- encoder ----
    conv1_w, conv1_b = w_((c, 1, k, k)), w_((c,))
    s1, t1 = bn_(c)
    M1, H1, W1 = conv2d_to_matrix(conv1_w, input_size, input_size, stride, pad)
    rep = H1 * W1
    p["conv1_w"] = jnp.asarray(M1)
    p["conv1_aux"] = aux(np.repeat(conv1_b, rep), np.repeat(s1, rep), np.repeat(t1, rep))

    conv2_w, conv2_b = w_((2 * c, c, k, k)), w_((2 * c,))
    s2, t2 = bn_(2 * c)
    M2, H2, W2 = conv2d_to_matrix(conv2_w, H1, W1, stride, pad)
    rep = H2 * W2
    p["conv2_w"] = jnp.asarray(M2)
    p["conv2_aux"] = aux(np.repeat(conv2_b, rep), np.repeat(s2, rep), np.repeat(t2, rep))

    flat_dim = latent_dims * dim_2 ** 2
    assert flat_dim == 2 * c * H2 * W2
    fc_w, fc_b = w_((latent_dims, flat_dim)), w_((latent_dims,))
    s3, t3 = bn_(latent_dims)
    p["fc_w"] = jnp.asarray(np.ascontiguousarray(fc_w.T))
    p["fc_aux"] = aux(fc_b, s3, t3)

    # ---- decoder ----
    fc2_w, fc2_b = w_((flat_dim, latent_dims)), w_((flat_dim,))
    s12, t12 = bn_(flat_dim)
    p["fc2_w"] = jnp.asarray(np.ascontiguousarray(fc2_w.T))
    p["fc2_aux"] = aux(fc2_b, s12, t12)

    d1_w, d1_b = w_((2 * c, c, k, k)), w_((c,))            # ConvTranspose2d(2c -> c)
    s22, t22 = bn_(c)
    Md1, Hd1, Wd1 = conv_transpose2d_to_matrix(d1_w, dim_2, dim_2, stride, pad)
    rep = Hd1 * Wd1
    p["dconv1_w"] = jnp.asarray(Md1)
    p["dconv1_aux"] = aux(np.repeat(d1_b, rep), np.repeat(s22, rep), np.repeat(t22, rep))

    d2_w, d2_b = w_((c, 1, k, k)), w_((1,))                # ConvTranspose2d(c -> 1)
    Md2, Hd2, Wd2 = conv_transpose2d_to_matrix(d2_w, Hd1, Wd1, stride, pad)
    rep = Hd2 * Wd2
    p["dconv2_w"] = jnp.asarray(Md2)
    p["dconv2_aux"] = aux(np.repeat(d2_b, rep),
                          np.ones(rep, np.float32), np.zeros(rep, np.float32))

    # ---- reward head ----
    r1_w, r1_b = w_((128, latent_dims)), w_((128,))
    sr1, tr1 = bn_(128)
    p["fcr1_w"] = jnp.asarray(np.ascontiguousarray(r1_w.T))
    p["fcr1_aux"] = aux(r1_b, sr1, tr1)

    r2_w, r2_b = w_((64, 128)), w_((64,))
    sr2, tr2 = bn_(64)
    p["fcr2_w"] = jnp.asarray(np.ascontiguousarray(r2_w.T))
    p["fcr2_aux"] = aux(r2_b, sr2, tr2)

    r3_w, r3_b = w_((32, 64)), w_((32,))
    sr3, tr3 = bn_(32)
    p["fcr3_w"] = jnp.asarray(np.ascontiguousarray(r3_w.T))
    p["fcr3_aux"] = aux(r3_b, sr3, tr3)

    r4_w, r4_b = w_((1, 32)), w_((1,))
    # pad the 1-wide head to 128 lanes for a lane-dense output store
    w4 = np.zeros((32, 128), np.float32)
    w4[:, 0] = r4_w[0]
    b4 = np.zeros(128, np.float32)
    b4[0] = r4_b[0]
    p["fcr4_w"] = jnp.asarray(w4)
    p["fcr4_aux"] = aux(b4, np.ones(128, np.float32), np.zeros(128, np.float32))

    return p


# ----------------------------------------------------------------------------
if __name__ == "__main__":
    # consistent with the module: input_size=16, capacity=4, latent_dims=8
    B, INPUT_SIZE, CAPACITY, LATENT = 2, 16, 4, 8

    key = jax.random.PRNGKey(0)
    k_param, k_x, k_r = jax.random.split(key, 3)

    params = init_params(k_param, capacity=CAPACITY, latent_dims=LATENT,
                         input_size=INPUT_SIZE)

    x = jax.random.normal(k_x, (B, 1, INPUT_SIZE, INPUT_SIZE), jnp.float32)  # NCHW
    r = jax.random.normal(k_r, (B,), jnp.float32)

    recon, reward = jax.jit(forward)(params, x, r)
    jax.block_until_ready((recon, reward))

    assert recon.shape == (B, 1, INPUT_SIZE, INPUT_SIZE)
    assert reward.shape == (B, 1)
    assert bool(jnp.all(jnp.isfinite(recon))) and bool(jnp.all(jnp.isfinite(reward)))
    assert bool(jnp.all((recon >= 0.0) & (recon <= 1.0)))    # sigmoid output
    assert bool(jnp.all((reward >= 0.0) & (reward <= 1.0)))  # normalized reward

    print("KERNEL_OK")
</pallas_src>

<mosaic_0001>
module attributes {stable_mosaic.version = 11 : i64} {
  func.func @_forward_kernel(%arg0: i32, %arg1: memref<2x256xf32, #tpu.memory_space<vmem>>, %arg2: memref<256x256xf32, #tpu.memory_space<vmem>>, %arg3: memref<3x256xf32, #tpu.memory_space<vmem>>, %arg4: memref<256x128xf32, #tpu.memory_space<vmem>>, %arg5: memref<3x128xf32, #tpu.memory_space<vmem>>, %arg6: memref<128x8xf32, #tpu.memory_space<vmem>>, %arg7: memref<3x8xf32, #tpu.memory_space<vmem>>, %arg8: memref<8x128xf32, #tpu.memory_space<vmem>>, %arg9: memref<3x128xf32, #tpu.memory_space<vmem>>, %arg10: memref<128x256xf32, #tpu.memory_space<vmem>>, %arg11: memref<3x256xf32, #tpu.memory_space<vmem>>, %arg12: memref<256x256xf32, #tpu.memory_space<vmem>>, %arg13: memref<3x256xf32, #tpu.memory_space<vmem>>, %arg14: memref<8x128xf32, #tpu.memory_space<vmem>>, %arg15: memref<3x128xf32, #tpu.memory_space<vmem>>, %arg16: memref<128x64xf32, #tpu.memory_space<vmem>>, %arg17: memref<3x64xf32, #tpu.memory_space<vmem>>, %arg18: memref<64x32xf32, #tpu.memory_space<vmem>>, %arg19: memref<3x32xf32, #tpu.memory_space<vmem>>, %arg20: memref<32x128xf32, #tpu.memory_space<vmem>>, %arg21: memref<3x128xf32, #tpu.memory_space<vmem>>, %arg22: memref<2x256xf32, #tpu.memory_space<vmem>>, %arg23: memref<2x128xf32, #tpu.memory_space<vmem>>) attributes {dimension_semantics = [#tpu.dimension_semantics<parallel>], iteration_bounds = array<i64: 1>, scalar_prefetch = 0 : i64, scratch_operands = 0 : i64, tpu.core_type = #tpu.core_type<tc>, window_params = [{transform_indices = @transform_0, window_bounds = array<i64: 2, 256>}, {pipeline_mode = #tpu.pipeline_mode<synchronous>, transform_indices = @transform_1, window_bounds = array<i64: 256, 256>}, {pipeline_mode = #tpu.pipeline_mode<synchronous>, transform_indices = @transform_2, window_bounds = array<i64: 3, 256>}, {pipeline_mode = #tpu.pipeline_mode<synchronous>, transform_indices = @transform_3, window_bounds = array<i64: 256, 128>}, {pipeline_mode = #tpu.pipeline_mode<synchronous>, transform_indices = @transform_4, window_bounds = array<i64: 3, 128>}, {pipeline_mode = #tpu.pipeline_mode<synchronous>, transform_indices = @transform_5, window_bounds = array<i64: 128, 8>}, {pipeline_mode = #tpu.pipeline_mode<synchronous>, transform_indices = @transform_6, window_bounds = array<i64: 3, 8>}, {pipeline_mode = #tpu.pipeline_mode<synchronous>, transform_indices = @transform_7, window_bounds = array<i64: 8, 128>}, {pipeline_mode = #tpu.pipeline_mode<synchronous>, transform_indices = @transform_8, window_bounds = array<i64: 3, 128>}, {pipeline_mode = #tpu.pipeline_mode<synchronous>, transform_indices = @transform_9, window_bounds = array<i64: 128, 256>}, {pipeline_mode = #tpu.pipeline_mode<synchronous>, transform_indices = @transform_10, window_bounds = array<i64: 3, 256>}, {pipeline_mode = #tpu.pipeline_mode<synchronous>, transform_indices = @transform_11, window_bounds = array<i64: 256, 256>}, {pipeline_mode = #tpu.pipeline_mode<synchronous>, transform_indices = @transform_12, window_bounds = array<i64: 3, 256>}, {pipeline_mode = #tpu.pipeline_mode<synchronous>, transform_indices = @transform_13, window_bounds = array<i64: 8, 128>}, {pipeline_mode = #tpu.pipeline_mode<synchronous>, transform_indices = @transform_14, window_bounds = array<i64: 3, 128>}, {pipeline_mode = #tpu.pipeline_mode<synchronous>, transform_indices = @transform_15, window_bounds = array<i64: 128, 64>}, {pipeline_mode = #tpu.pipeline_mode<synchronous>, transform_indices = @transform_16, window_bounds = array<i64: 3, 64>}, {pipeline_mode = #tpu.pipeline_mode<synchronous>, transform_indices = @transform_17, window_bounds = array<i64: 64, 32>}, {pipeline_mode = #tpu.pipeline_mode<synchronous>, transform_indices = @transform_18, window_bounds = array<i64: 3, 32>}, {pipeline_mode = #tpu.pipeline_mode<synchronous>, transform_indices = @transform_19, window_bounds = array<i64: 32, 128>}, {pipeline_mode = #tpu.pipeline_mode<synchronous>, transform_indices = @transform_20, window_bounds = array<i64: 3, 128>}, {transform_indices = @transform_21, window_bounds = array<i64: 2, 256>}, {transform_indices = @transform_22, window_bounds = array<i64: 2, 128>}]} {
    %c0 = arith.constant 0 : index
    %c0_0 = arith.constant 0 : index
    %0 = vector.load %arg1[%c0, %c0_0] : memref<2x256xf32, #tpu.memory_space<vmem>>, vector<2x256xf32>
    %c0_1 = arith.constant 0 : index
    %c0_2 = arith.constant 0 : index
    %1 = vector.load %arg2[%c0_1, %c0_2] : memref<256x256xf32, #tpu.memory_space<vmem>>, vector<256x256xf32>
    %c0_3 = arith.constant 0 : index
    %c0_4 = arith.constant 0 : index
    %2 = vector.load %arg3[%c0_3, %c0_4] : memref<3x256xf32, #tpu.memory_space<vmem>>, vector<3x256xf32>
    %cst = arith.constant dense<0.000000e+00> : vector<2x256xf32>
    %3 = tpu.matmul %0, %1, %cst {dimension_numbers = #tpu.dot_dimension_numbers<[1], [0], [0], [1], [0, 0, 1, 1], [], []>} : vector<2x256xf32>, vector<256x256xf32>, vector<2x256xf32> -> vector<2x256xf32>
    %4 = vector.extract_strided_slice %2 {offsets = [0, 0], sizes = [1, 256], strides = [1, 1]} : vector<3x256xf32> to vector<1x256xf32>
    %5 = vector.broadcast %4 : vector<1x256xf32> to vector<2x256xf32>
    %6 = arith.addf %3, %5 : vector<2x256xf32>
    %cst_5 = arith.constant 0.000000e+00 : f32
    %7 = vector.broadcast %cst_5 : f32 to vector<2x256xf32>
    %8 = arith.maximumf %6, %7 : vector<2x256xf32>
    %9 = vector.extract_strided_slice %2 {offsets = [1, 0], sizes = [1, 256], strides = [1, 1]} : vector<3x256xf32> to vector<1x256xf32>
    %10 = vector.broadcast %9 : vector<1x256xf32> to vector<2x256xf32>
    %11 = arith.mulf %8, %10 : vector<2x256xf32>
    %12 = vector.extract_strided_slice %2 {offsets = [2, 0], sizes = [1, 256], strides = [1, 1]} : vector<3x256xf32> to vector<1x256xf32>
    %13 = vector.broadcast %12 : vector<1x256xf32> to vector<2x256xf32>
    %14 = arith.addf %11, %13 : vector<2x256xf32>
    %c0_6 = arith.constant 0 : index
    %c0_7 = arith.constant 0 : index
    %15 = vector.load %arg4[%c0_6, %c0_7] : memref<256x128xf32, #tpu.memory_space<vmem>>, vector<256x128xf32>
    %c0_8 = arith.constant 0 : index
    %c0_9 = arith.constant 0 : index
    %16 = vector.load %arg5[%c0_8, %c0_9] : memref<3x128xf32, #tpu.memory_space<vmem>>, vector<3x128xf32>
    %cst_10 = arith.constant dense<0.000000e+00> : vector<2x128xf32>
    %17 = tpu.matmul %14, %15, %cst_10 {dimension_numbers = #tpu.dot_dimension_numbers<[1], [0], [0], [1], [0, 0, 1, 1], [], []>} : vector<2x256xf32>, vector<256x128xf32>, vector<2x128xf32> -> vector<2x128xf32>
    %18 = vector.extract_strided_slice %16 {offsets = [0, 0], sizes = [1, 128], strides = [1, 1]} : vector<3x128xf32> to vector<1x128xf32>
    %19 = vector.broadcast %18 : vector<1x128xf32> to vector<2x128xf32>
    %20 = arith.addf %17, %19 : vector<2x128xf32>
    %cst_11 = arith.constant 0.000000e+00 : f32
    %21 = vector.broadcast %cst_11 : f32 to vector<2x128xf32>
    %22 = arith.maximumf %20, %21 : vector<2x128xf32>
    %23 = vector.extract_strided_slice %16 {offsets = [1, 0], sizes = [1, 128], strides = [1, 1]} : vector<3x128xf32> to vector<1x128xf32>
    %24 = vector.broadcast %23 : vector<1x128xf32> to vector<2x128xf32>
    %25 = arith.mulf %22, %24 : vector<2x128xf32>
    %26 = vector.extract_strided_slice %16 {offsets = [2, 0], sizes = [1, 128], strides = [1, 1]} : vector<3x128xf32> to vector<1x128xf32>
    %27 = vector.broadcast %26 : vector<1x128xf32> to vector<2x128xf32>
    %28 = arith.addf %25, %27 : vector<2x128xf32>
    %c0_12 = arith.constant 0 : index
    %c0_13 = arith.constant 0 : index
    %29 = vector.load %arg6[%c0_12, %c0_13] : memref<128x8xf32, #tpu.memory_space<vmem>>, vector<128x8xf32>
    %c0_14 = arith.constant 0 : index
    %c0_15 = arith.constant 0 : index
    %30 = vector.load %arg7[%c0_14, %c0_15] : memref<3x8xf32, #tpu.memory_space<vmem>>, vector<3x8xf32>
    %cst_16 = arith.constant dense<0.000000e+00> : vector<2x8xf32>
    %31 = tpu.matmul %28, %29, %cst_16 {dimension_numbers = #tpu.dot_dimension_numbers<[1], [0], [0], [1], [0, 0, 1, 1], [], []>} : vector<2x128xf32>, vector<128x8xf32>, vector<2x8xf32> -> vector<2x8xf32>
    %32 = vector.extract_strided_slice %30 {offsets = [0, 0], sizes = [1, 8], strides = [1, 1]} : vector<3x8xf32> to vector<1x8xf32>
    %33 = vector.broadcast %32 : vector<1x8xf32> to vector<2x8xf32>
    %34 = arith.addf %31, %33 : vector<2x8xf32>
    %cst_17 = arith.constant 0.000000e+00 : f32
    %35 = vector.broadcast %cst_17 : f32 to vector<2x8xf32>
    %36 = arith.maximumf %34, %35 : vector<2x8xf32>
    %37 = vector.extract_strided_slice %30 {offsets = [1, 0], sizes = [1, 8], strides = [1, 1]} : vector<3x8xf32> to vector<1x8xf32>
    %38 = vector.broadcast %37 : vector<1x8xf32> to vector<2x8xf32>
    %39 = arith.mulf %36, %38 : vector<2x8xf32>
    %40 = vector.extract_strided_slice %30 {offsets = [2, 0], sizes = [1, 8], strides = [1, 1]} : vector<3x8xf32> to vector<1x8xf32>
    %41 = vector.broadcast %40 : vector<1x8xf32> to vector<2x8xf32>
    %42 = arith.addf %39, %41 : vector<2x8xf32>
    %c0_18 = arith.constant 0 : index
    %c0_19 = arith.constant 0 : index
    %43 = vector.load %arg8[%c0_18, %c0_19] : memref<8x128xf32, #tpu.memory_space<vmem>>, vector<8x128xf32>
    %c0_20 = arith.constant 0 : index
    %c0_21 = arith.constant 0 : index
    %44 = vector.load %arg9[%c0_20, %c0_21] : memref<3x128xf32, #tpu.memory_space<vmem>>, vector<3x128xf32>
    %cst_22 = arith.constant dense<0.000000e+00> : vector<2x128xf32>
    %45 = tpu.matmul %42, %43, %cst_22 {dimension_numbers = #tpu.dot_dimension_numbers<[1], [0], [0], [1], [0, 0, 1, 1], [], []>} : vector<2x8xf32>, vector<8x128xf32>, vector<2x128xf32> -> vector<2x128xf32>
    %46 = vector.extract_strided_slice %44 {offsets = [0, 0], sizes = [1, 128], strides = [1, 1]} : vector<3x128xf32> to vector<1x128xf32>
    %47 = vector.broadcast %46 : vector<1x128xf32> to vector<2x128xf32>
    %48 = arith.addf %45, %47 : vector<2x128xf32>
    %cst_23 = arith.constant 0.000000e+00 : f32
    %49 = vector.broadcast %cst_23 : f32 to vector<2x128xf32>
    %50 = arith.maximumf %48, %49 : vector<2x128xf32>
    %51 = vector.extract_strided_slice %44 {offsets = [1, 0], sizes = [1, 128], strides = [1, 1]} : vector<3x128xf32> to vector<1x128xf32>
    %52 = vector.broadcast %51 : vector<1x128xf32> to vector<2x128xf32>
    %53 = arith.mulf %50, %52 : vector<2x128xf32>
    %54 = vector.extract_strided_slice %44 {offsets = [2, 0], sizes = [1, 128], strides = [1, 1]} : vector<3x128xf32> to vector<1x128xf32>
    %55 = vector.broadcast %54 : vector<1x128xf32> to vector<2x128xf32>
    %56 = arith.addf %53, %55 : vector<2x128xf32>
    %c0_24 = arith.constant 0 : index
    %c0_25 = arith.constant 0 : index
    %57 = vector.load %arg10[%c0_24, %c0_25] : memref<128x256xf32, #tpu.memory_space<vmem>>, vector<128x256xf32>
    %c0_26 = arith.constant 0 : index
    %c0_27 = arith.constant 0 : index
    %58 = vector.load %arg11[%c0_26, %c0_27] : memref<3x256xf32, #tpu.memory_space<vmem>>, vector<3x256xf32>
    %cst_28 = arith.constant dense<0.000000e+00> : vector<2x256xf32>
    %59 = tpu.matmul %56, %57, %cst_28 {dimension_numbers = #tpu.dot_dimension_numbers<[1], [0], [0], [1], [0, 0, 1, 1], [], []>} : vector<2x128xf32>, vector<128x256xf32>, vector<2x256xf32> -> vector<2x256xf32>
    %60 = vector.extract_strided_slice %58 {offsets = [0, 0], sizes = [1, 256], strides = [1, 1]} : vector<3x256xf32> to vector<1x256xf32>
    %61 = vector.broadcast %60 : vector<1x256xf32> to vector<2x256xf32>
    %62 = arith.addf %59, %61 : vector<2x256xf32>
    %cst_29 = arith.constant 0.000000e+00 : f32
    %63 = vector.broadcast %cst_29 : f32 to vector<2x256xf32>
    %64 = arith.maximumf %62, %63 : vector<2x256xf32>
    %65 = vector.extract_strided_slice %58 {offsets = [1, 0], sizes = [1, 256], strides = [1, 1]} : vector<3x256xf32> to vector<1x256xf32>
    %66 = vector.broadcast %65 : vector<1x256xf32> to vector<2x256xf32>
    %67 = arith.mulf %64, %66 : vector<2x256xf32>
    %68 = vector.extract_strided_slice %58 {offsets = [2, 0], sizes = [1, 256], strides = [1, 1]} : vector<3x256xf32> to vector<1x256xf32>
    %69 = vector.broadcast %68 : vector<1x256xf32> to vector<2x256xf32>
    %70 = arith.addf %67, %69 : vector<2x256xf32>
    %c0_30 = arith.constant 0 : index
    %c0_31 = arith.constant 0 : index
    %71 = vector.load %arg12[%c0_30, %c0_31] : memref<256x256xf32, #tpu.memory_space<vmem>>, vector<256x256xf32>
    %c0_32 = arith.constant 0 : index
    %c0_33 = arith.constant 0 : index
    %72 = vector.load %arg13[%c0_32, %c0_33] : memref<3x256xf32, #tpu.memory_space<vmem>>, vector<3x256xf32>
    %cst_34 = arith.constant dense<0.000000e+00> : vector<2x256xf32>
    %73 = tpu.matmul %70, %71, %cst_34 {dimension_numbers = #tpu.dot_dimension_numbers<[1], [0], [0], [1], [0, 0, 1, 1], [], []>} : vector<2x256xf32>, vector<256x256xf32>, vector<2x256xf32> -> vector<2x256xf32>
    %74 = vector.extract_strided_slice %72 {offsets = [0, 0], sizes = [1, 256], strides = [1, 1]} : vector<3x256xf32> to vector<1x256xf32>
    %75 = vector.broadcast %74 : vector<1x256xf32> to vector<2x256xf32>
    %76 = arith.addf %73, %75 : vector<2x256xf32>
    %77 = arith.negf %76 : vector<2x256xf32>
    %78 = math.exp %77 : vector<2x256xf32>
    %cst_35 = arith.constant 1.000000e+00 : f32
    %79 = vector.broadcast %cst_35 : f32 to vector<2x256xf32>
    %80 = arith.addf %79, %78 : vector<2x256xf32>
    %81 = arith.divf %79, %80 : vector<2x256xf32>
    %82 = vector.extract_strided_slice %72 {offsets = [1, 0], sizes = [1, 256], strides = [1, 1]} : vector<3x256xf32> to vector<1x256xf32>
    %83 = vector.broadcast %82 : vector<1x256xf32> to vector<2x256xf32>
    %84 = arith.mulf %81, %83 : vector<2x256xf32>
    %85 = vector.extract_strided_slice %72 {offsets = [2, 0], sizes = [1, 256], strides = [1, 1]} : vector<3x256xf32> to vector<1x256xf32>
    %86 = vector.broadcast %85 : vector<1x256xf32> to vector<2x256xf32>
    %87 = arith.addf %84, %86 : vector<2x256xf32>
    %c0_36 = arith.constant 0 : index
    %c0_37 = arith.constant 0 : index
    %88 = vector.load %arg22[%c0_36, %c0_37] : memref<2x256xf32, #tpu.memory_space<vmem>>, vector<2x256xf32>
    tpu.vector_store %arg22[%c0_36, %c0_37], %87 {strides = array<i32>} : memref<2x256xf32, #tpu.memory_space<vmem>>, vector<2x256xf32>,
    %c0_38 = arith.constant 0 : index
    %c0_39 = arith.constant 0 : index
    %89 = vector.load %arg14[%c0_38, %c0_39] : memref<8x128xf32, #tpu.memory_space<vmem>>, vector<8x128xf32>
    %c0_40 = arith.constant 0 : index
    %c0_41 = arith.constant 0 : index
    %90 = vector.load %arg15[%c0_40, %c0_41] : memref<3x128xf32, #tpu.memory_space<vmem>>, vector<3x128xf32>
    %cst_42 = arith.constant dense<0.000000e+00> : vector<2x128xf32>
    %91 = tpu.matmul %42, %89, %cst_42 {dimension_numbers = #tpu.dot_dimension_numbers<[1], [0], [0], [1], [0, 0, 1, 1], [], []>} : vector<2x8xf32>, vector<8x128xf32>, vector<2x128xf32> -> vector<2x128xf32>
    %92 = vector.extract_strided_slice %90 {offsets = [0, 0], sizes = [1, 128], strides = [1, 1]} : vector<3x128xf32> to vector<1x128xf32>
    %93 = vector.broadcast %92 : vector<1x128xf32> to vector<2x128xf32>
    %94 = arith.addf %91, %93 : vector<2x128xf32>
    %cst_43 = arith.constant 0.000000e+00 : f32
    %95 = vector.broadcast %cst_43 : f32 to vector<2x128xf32>
    %96 = arith.maximumf %94, %95 : vector<2x128xf32>
    %97 = vector.extract_strided_slice %90 {offsets = [1, 0], sizes = [1, 128], strides = [1, 1]} : vector<3x128xf32> to vector<1x128xf32>
    %98 = vector.broadcast %97 : vector<1x128xf32> to vector<2x128xf32>
    %99 = arith.mulf %96, %98 : vector<2x128xf32>
    %100 = vector.extract_strided_slice %90 {offsets = [2, 0], sizes = [1, 128], strides = [1, 1]} : vector<3x128xf32> to vector<1x128xf32>
    %101 = vector.broadcast %100 : vector<1x128xf32> to vector<2x128xf32>
    %102 = arith.addf %99, %101 : vector<2x128xf32>
    %c0_44 = arith.constant 0 : index
    %c0_45 = arith.constant 0 : index
    %103 = vector.load %arg16[%c0_44, %c0_45] : memref<128x64xf32, #tpu.memory_space<vmem>>, vector<128x64xf32>
    %c0_46 = arith.constant 0 : index
    %c0_47 = arith.constant 0 : index
    %104 = vector.load %arg17[%c0_46, %c0_47] : memref<3x64xf32, #tpu.memory_space<vmem>>, vector<3x64xf32>
    %cst_48 = arith.constant dense<0.000000e+00> : vector<2x64xf32>
    %105 = tpu.matmul %102, %103, %cst_48 {dimension_numbers = #tpu.dot_dimension_numbers<[1], [0], [0], [1], [0, 0, 1, 1], [], []>} : vector<2x128xf32>, vector<128x64xf32>, vector<2x64xf32> -> vector<2x64xf32>
    %106 = vector.extract_strided_slice %104 {offsets = [0, 0], sizes = [1, 64], strides = [1, 1]} : vector<3x64xf32> to vector<1x64xf32>
    %107 = vector.broadcast %106 : vector<1x64xf32> to vector<2x64xf32>
    %108 = arith.addf %105, %107 : vector<2x64xf32>
    %cst_49 = arith.constant 0.000000e+00 : f32
    %109 = vector.broadcast %cst_49 : f32 to vector<2x64xf32>
    %110 = arith.maximumf %108, %109 : vector<2x64xf32>
    %111 = vector.extract_strided_slice %104 {offsets = [1, 0], sizes = [1, 64], strides = [1, 1]} : vector<3x64xf32> to vector<1x64xf32>
    %112 = vector.broadcast %111 : vector<1x64xf32> to vector<2x64xf32>
    %113 = arith.mulf %110, %112 : vector<2x64xf32>
    %114 = vector.extract_strided_slice %104 {offsets = [2, 0], sizes = [1, 64], strides = [1, 1]} : vector<3x64xf32> to vector<1x64xf32>
    %115 = vector.broadcast %114 : vector<1x64xf32> to vector<2x64xf32>
    %116 = arith.addf %113, %115 : vector<2x64xf32>
    %c0_50 = arith.constant 0 : index
    %c0_51 = arith.constant 0 : index
    %117 = vector.load %arg18[%c0_50, %c0_51] : memref<64x32xf32, #tpu.memory_space<vmem>>, vector<64x32xf32>
    %c0_52 = arith.constant 0 : index
    %c0_53 = arith.constant 0 : index
    %118 = vector.load %arg19[%c0_52, %c0_53] : memref<3x32xf32, #tpu.memory_space<vmem>>, vector<3x32xf32>
    %cst_54 = arith.constant dense<0.000000e+00> : vector<2x32xf32>
    %119 = tpu.matmul %116, %117, %cst_54 {dimension_numbers = #tpu.dot_dimension_numbers<[1], [0], [0], [1], [0, 0, 1, 1], [], []>} : vector<2x64xf32>, vector<64x32xf32>, vector<2x32xf32> -> vector<2x32xf32>
    %120 = vector.extract_strided_slice %118 {offsets = [0, 0], sizes = [1, 32], strides = [1, 1]} : vector<3x32xf32> to vector<1x32xf32>
    %121 = vector.broadcast %120 : vector<1x32xf32> to vector<2x32xf32>
    %122 = arith.addf %119, %121 : vector<2x32xf32>
    %cst_55 = arith.constant 0.000000e+00 : f32
    %123 = vector.broadcast %cst_55 : f32 to vector<2x32xf32>
    %124 = arith.maximumf %122, %123 : vector<2x32xf32>
    %125 = vector.extract_strided_slice %118 {offsets = [1, 0], sizes = [1, 32], strides = [1, 1]} : vector<3x32xf32> to vector<1x32xf32>
    %126 = vector.broadcast %125 : vector<1x32xf32> to vector<2x32xf32>
    %127 = arith.mulf %124, %126 : vector<2x32xf32>
    %128 = vector.extract_strided_slice %118 {offsets = [2, 0], sizes = [1, 32], strides = [1, 1]} : vector<3x32xf32> to vector<1x32xf32>
    %129 = vector.broadcast %128 : vector<1x32xf32> to vector<2x32xf32>
    %130 = arith.addf %127, %129 : vector<2x32xf32>
    %c0_56 = arith.constant 0 : index
    %c0_57 = arith.constant 0 : index
    %131 = vector.load %arg20[%c0_56, %c0_57] : memref<32x128xf32, #tpu.memory_space<vmem>>, vector<32x128xf32>
    %c0_58 = arith.constant 0 : index
    %c0_59 = arith.constant 0 : index
    %132 = vector.load %arg21[%c0_58, %c0_59] : memref<3x128xf32, #tpu.memory_space<vmem>>, vector<3x128xf32>
    %cst_60 = arith.constant dense<0.000000e+00> : vector<2x128xf32>
    %133 = tpu.matmul %130, %131, %cst_60 {dimension_numbers = #tpu.dot_dimension_numbers<[1], [0], [0], [1], [0, 0, 1, 1], [], []>} : vector<2x32xf32>, vector<32x128xf32>, vector<2x128xf32> -> vector<2x128xf32>
    %134 = vector.extract_strided_slice %132 {offsets = [0, 0], sizes = [1, 128], strides = [1, 1]} : vector<3x128xf32> to vector<1x128xf32>
    %135 = vector.broadcast %134 : vector<1x128xf32> to vector<2x128xf32>
    %136 = arith.addf %133, %135 : vector<2x128xf32>
    %137 = arith.negf %136 : vector<2x128xf32>
    %138 = math.exp %137 : vector<2x128xf32>
    %cst_61 = arith.constant 1.000000e+00 : f32
    %139 = vector.broadcast %cst_61 : f32 to vector<2x128xf32>
    %140 = arith.addf %139, %138 : vector<2x128xf32>
    %141 = arith.divf %139, %140 : vector<2x128xf32>
    %142 = vector.extract_strided_slice %132 {offsets = [1, 0], sizes = [1, 128], strides = [1, 1]} : vector<3x128xf32> to vector<1x128xf32>
    %143 = vector.broadcast %142 : vector<1x128xf32> to vector<2x128xf32>
    %144 = arith.mulf %141, %143 : vector<2x128xf32>
    %145 = vector.extract_strided_slice %132 {offsets = [2, 0], sizes = [1, 128], strides = [1, 1]} : vector<3x128xf32> to vector<1x128xf32>
    %146 = vector.broadcast %145 : vector<1x128xf32> to vector<2x128xf32>
    %147 = arith.addf %144, %146 : vector<2x128xf32>
    %c0_62 = arith.constant 0 : index
    %c0_63 = arith.constant 0 : index
    %148 = vector.load %arg23[%c0_62, %c0_63] : memref<2x128xf32, #tpu.memory_space<vmem>>, vector<2x128xf32>
    tpu.vector_store %arg23[%c0_62, %c0_63], %147 {strides = array<i32>} : memref<2x128xf32, #tpu.memory_space<vmem>>, vector<2x128xf32>,
    return
  }
  func.func @transform_0(%arg0: i32) -> (i32, i32) {
    %c0_i32 = arith.constant 0 : i32
    %c0_i32_0 = arith.constant 0 : i32
    return %arg0, %c0_i32 : i32, i32
  }
  func.func @transform_1(%arg0: i32) -> (i32, i32) {
    %c0_i32 = arith.constant 0 : i32
    %c0_i32_0 = arith.constant 0 : i32
    %c0_i32_1 = arith.constant 0 : i32
    return %c0_i32, %c0_i32_0 : i32, i32
  }
  func.func @transform_2(%arg0: i32) -> (i32, i32) {
    %c0_i32 = arith.constant 0 : i32
    %c0_i32_0 = arith.constant 0 : i32
    %c0_i32_1 = arith.constant 0 : i32
    return %c0_i32, %c0_i32_0 : i32, i32
  }
  func.func @transform_3(%arg0: i32) -> (i32, i32) {
    %c0_i32 = arith.constant 0 : i32
    %c0_i32_0 = arith.constant 0 : i32
    %c0_i32_1 = arith.constant 0 : i32
    return %c0_i32, %c0_i32_0 : i32, i32
  }
  func.func @transform_4(%arg0: i32) -> (i32, i32) {
    %c0_i32 = arith.constant 0 : i32
    %c0_i32_0 = arith.constant 0 : i32
    %c0_i32_1 = arith.constant 0 : i32
    return %c0_i32, %c0_i32_0 : i32, i32
  }
  func.func @transform_5(%arg0: i32) -> (i32, i32) {
    %c0_i32 = arith.constant 0 : i32
    %c0_i32_0 = arith.constant 0 : i32
    %c0_i32_1 = arith.constant 0 : i32
    return %c0_i32, %c0_i32_0 : i32, i32
  }
  func.func @transform_6(%arg0: i32) -> (i32, i32) {
    %c0_i32 = arith.constant 0 : i32
    %c0_i32_0 = arith.constant 0 : i32
    %c0_i32_1 = arith.constant 0 : i32
    return %c0_i32, %c0_i32_0 : i32, i32
  }
  func.func @transform_7(%arg0: i32) -> (i32, i32) {
    %c0_i32 = arith.constant 0 : i32
    %c0_i32_0 = arith.constant 0 : i32
    %c0_i32_1 = arith.constant 0 : i32
    return %c0_i32, %c0_i32_0 : i32, i32
  }
  func.func @transform_8(%arg0: i32) -> (i32, i32) {
    %c0_i32 = arith.constant 0 : i32
    %c0_i32_0 = arith.constant 0 : i32
    %c0_i32_1 = arith.constant 0 : i32
    return %c0_i32, %c0_i32_0 : i32, i32
  }
  func.func @transform_9(%arg0: i32) -> (i32, i32) {
    %c0_i32 = arith.constant 0 : i32
    %c0_i32_0 = arith.constant 0 : i32
    %c0_i32_1 = arith.constant 0 : i32
    return %c0_i32, %c0_i32_0 : i32, i32
  }
  func.func @transform_10(%arg0: i32) -> (i32, i32) {
    %c0_i32 = arith.constant 0 : i32
    %c0_i32_0 = arith.constant 0 : i32
    %c0_i32_1 = arith.constant 0 : i32
    return %c0_i32, %c0_i32_0 : i32, i32
  }
  func.func @transform_11(%arg0: i32) -> (i32, i32) {
    %c0_i32 = arith.constant 0 : i32
    %c0_i32_0 = arith.constant 0 : i32
    %c0_i32_1 = arith.constant 0 : i32
    return %c0_i32, %c0_i32_0 : i32, i32
  }
  func.func @transform_12(%arg0: i32) -> (i32, i32) {
    %c0_i32 = arith.constant 0 : i32
    %c0_i32_0 = arith.constant 0 : i32
    %c0_i32_1 = arith.constant 0 : i32
    return %c0_i32, %c0_i32_0 : i32, i32
  }
  func.func @transform_13(%arg0: i32) -> (i32, i32) {
    %c0_i32 = arith.constant 0 : i32
    %c0_i32_0 = arith.constant 0 : i32
    %c0_i32_1 = arith.constant 0 : i32
    return %c0_i32, %c0_i32_0 : i32, i32
  }
  func.func @transform_14(%arg0: i32) -> (i32, i32) {
    %c0_i32 = arith.constant 0 : i32
    %c0_i32_0 = arith.constant 0 : i32
    %c0_i32_1 = arith.constant 0 : i32
    return %c0_i32, %c0_i32_0 : i32, i32
  }
  func.func @transform_15(%arg0: i32) -> (i32, i32) {
    %c0_i32 = arith.constant 0 : i32
    %c0_i32_0 = arith.constant 0 : i32
    %c0_i32_1 = arith.constant 0 : i32
    return %c0_i32, %c0_i32_0 : i32, i32
  }
  func.func @transform_16(%arg0: i32) -> (i32, i32) {
    %c0_i32 = arith.constant 0 : i32
    %c0_i32_0 = arith.constant 0 : i32
    %c0_i32_1 = arith.constant 0 : i32
    return %c0_i32, %c0_i32_0 : i32, i32
  }
  func.func @transform_17(%arg0: i32) -> (i32, i32) {
    %c0_i32 = arith.constant 0 : i32
    %c0_i32_0 = arith.constant 0 : i32
    %c0_i32_1 = arith.constant 0 : i32
    return %c0_i32, %c0_i32_0 : i32, i32
  }
  func.func @transform_18(%arg0: i32) -> (i32, i32) {
    %c0_i32 = arith.constant 0 : i32
    %c0_i32_0 = arith.constant 0 : i32
    %c0_i32_1 = arith.constant 0 : i32
    return %c0_i32, %c0_i32_0 : i32, i32
  }
  func.func @transform_19(%arg0: i32) -> (i32, i32) {
    %c0_i32 = arith.constant 0 : i32
    %c0_i32_0 = arith.constant 0 : i32
    %c0_i32_1 = arith.constant 0 : i32
    return %c0_i32, %c0_i32_0 : i32, i32
  }
  func.func @transform_20(%arg0: i32) -> (i32, i32) {
    %c0_i32 = arith.constant 0 : i32
    %c0_i32_0 = arith.constant 0 : i32
    %c0_i32_1 = arith.constant 0 : i32
    return %c0_i32, %c0_i32_0 : i32, i32
  }
  func.func @transform_21(%arg0: i32) -> (i32, i32) {
    %c0_i32 = arith.constant 0 : i32
    %c0_i32_0 = arith.constant 0 : i32
    return %arg0, %c0_i32 : i32, i32
  }
  func.func @transform_22(%arg0: i32) -> (i32, i32) {
    %c0_i32 = arith.constant 0 : i32
    %c0_i32_0 = arith.constant 0 : i32
    return %arg0, %c0_i32 : i32, i32
  }
}

</mosaic_0001>

<bundles_post_ra>
// kernel: forward.1
= control target key start
LH: loop header
LB: loop body
LE: loop exit
PB: predicated region body
PF: predicated region fallthrough
CT: control target
= control target key end

     0   :  { %s2244_s0 = inlined_call_operand.vmem [shape: f32[2,256], index: 0, kind: input, shape index: {}]   ;;  %s2245_s1 = inlined_call_operand.hbm [shape: f32[256,256], index: 1, kind: input, shape index: {}]   ;;  %s2246_s2 = inlined_call_operand.vmem [shape: f32[3,256], index: 2, kind: input, shape index: {}]   ;;  %s2247_s3 = inlined_call_operand.vmem [shape: f32[256,128], index: 3, kind: input, shape index: {}]   ;;  %s2248_s4 = inlined_call_operand.vmem [shape: f32[3,128], index: 4, kind: input, shape index: {}]   ;;  %s2249_s5 = inlined_call_operand.vmem [shape: f32[128,8], index: 5, kind: input, shape index: {}]   ;;  %s2250_s6 = inlined_call_operand.vmem [shape: f32[3,8], index: 6, kind: input, shape index: {}]   ;;  %s2251_s7 = inlined_call_operand.vmem [shape: f32[8,128], index: 7, kind: input, shape index: {}]   ;;  %s2252_s8 = inlined_call_operand.vmem [shape: f32[3,128], index: 8, kind: input, shape index: {}]   ;;  %s2253_s9 = inlined_call_operand.hbm [shape: f32[128,256], index: 9, kind: input, shape index: {}]   ;;  %s2254_s10 = inlined_call_operand.vmem [shape: f32[3,256], index: 10, kind: input, shape index: {}]   ;;  %s2255_s11 = inlined_call_operand.hbm [shape: f32[256,256], index: 11, kind: input, shape index: {}]   ;;  %s2256_s12 = inlined_call_operand.vmem [shape: f32[3,256], index: 12, kind: input, shape index: {}]   ;;  %s2257_s13 = inlined_call_operand.vmem [shape: f32[8,128], index: 13, kind: input, shape index: {}]   ;;  %s2258_s14 = inlined_call_operand.vmem [shape: f32[3,128], index: 14, kind: input, shape index: {}]   ;;  %s2259_s15 = inlined_call_operand.vmem [shape: f32[128,64], index: 15, kind: input, shape index: {}]   ;;  %s2260_s16 = inlined_call_operand.vmem [shape: f32[3,64], index: 16, kind: input, shape index: {}]   ;;  %s2261_s17 = inlined_call_operand.vmem [shape: f32[64,32], index: 17, kind: input, shape index: {}]   ;;  %s2262_s18 = inlined_call_operand.vmem [shape: f32[3,32], index: 18, kind: input, shape index: {}]   ;;  %s2263_s19 = inlined_call_operand.vmem [shape: f32[32,128], index: 19, kind: input, shape index: {}]   ;;  %s2264_s20 = inlined_call_operand.vmem [shape: f32[3,128], index: 20, kind: input, shape index: {}]   ;;  %s2265_s21 = inlined_call_operand.vmem [shape: f32[2,256], index: 21, kind: output, shape index: {0}]   ;;  %s2266_s22 = inlined_call_operand.vmem [shape: f32[2,128], index: 22, kind: output, shape index: {1}]  }
   0x1   :  { %2269 = sst [smem:[#allocation9_spill]] %s2244_s0 }
   0x2   :  { %2270 = sst [smem:[#allocation10_spill]] %s2245_s1 }
   0x3   :  { %2271 = sst [smem:[#allocation11_spill]] %s2246_s2 }
   0x4   :  { %2272 = sst [smem:[#allocation12_spill]] %s2247_s3 }
   0x5   :  { %2273 = sst [smem:[#allocation13_spill]] %s2248_s4 }
   0x6   :  { %2274 = sst [smem:[#allocation14_spill]] %s2249_s5 }
   0x7   :  { %2275 = sst [smem:[#allocation15_spill]] %s2250_s6 }
   0x8   :  { %28 = vsyncpa [#allocation3], 0 }
   0x9   :  { %29 = vsyncpa [#allocation5], 0  ;;  %s1701_s3 = smov [#allocation4]   ;;  %s1702_s29 = smov [#allocation2]  }
   0xa   :  { %s63_s28 = sshll.u32 %s1701_s3, 4  ;;  %s37_s30 = sshll.u32 %s1702_s29, 4  ;;  %s64_s28 = int_to_ptr.vmem [resolvable:$true] %s63_s28  ;;  %s38_s30 = int_to_ptr.vmem [resolvable:$true] %s37_s30 }
   0xb   :  { %s1645_s4 = scalar_lea.vmem %s64_s28, 4096  ;;  %p1650_p1 = scmp.lt.s32.totalorder %s64_s28, %s64_s28 }
   0xc   :  { %p1646_p0 = scmp.ne.s32.totalorder %s64_s28, %s1645_s4  ;;  %p1651_p2 = scmp.lt.s32.totalorder %s1645_s4, %s1645_s4 }
   0xe   :  { %p1652_p3 = por %p1651_p2, %p1650_p1 }
  0x10   :  { %p1653_p4 = pnand %p1652_p3, %p1646_p0 }
  0x12   :  { %1656 = shalt.err (!%p1653_p4)
}
  0x13   :  { %s1703_s0 = smov 256   ;;  %s1704_s23 = smov 16  }
  0x14   :  { %69 = dma.hbm_to_vmem [thread:$0]  %s2253_s9, 4096, %s64_s28, [#allocation5], %s1703_s0, %s1703_s0, %s1704_s23  }
  0x15   :  { %s1665_s24 = scalar_lea.vmem %s38_s30, 8192  ;;  %p1670_p6 = scmp.lt.s32.totalorder %s38_s30, %s38_s30 }
  0x16   :  { %p1666_p5 = scmp.ne.s32.totalorder %s38_s30, %s1665_s24  ;;  %p1671_p7 = scmp.lt.s32.totalorder %s1665_s24, %s1665_s24 }
  0x18   :  { %p1672_p8 = por %p1671_p7, %p1670_p6 }
  0x1a   :  { %p1673_p9 = pnand %p1672_p8, %p1666_p5 }
  0x1c   :  { %1676 = shalt.err (!%p1673_p9)
}
  0x1d   :  { %s2276_s26 = sld [smem:[#allocation10_spill]]  ;;  %s1705_s2 = smov [#allocation6]  }
  0x1e   :  { %s77_s27 = sshll.u32 %s1705_s2, 4  ;;  %s78_s27 = int_to_ptr.vmem [resolvable:$true] %s77_s27 }
  0x1f   :  { %s1685_s3 = scalar_lea.vmem %s78_s27, 8192  ;;  %p1690_p11 = scmp.lt.s32.totalorder %s78_s27, %s78_s27 }
  0x20   :  { %p1686_p10 = scmp.ne.s32.totalorder %s78_s27, %s1685_s3  ;;  %p1691_p12 = scmp.lt.s32.totalorder %s1685_s3, %s1685_s3 }
  0x22   :  { %p1692_p13 = por %p1691_p12, %p1690_p11 }
  0x23   :  { %43 = dma.hbm_to_vmem [thread:$0]  %s2276_s26, 8192, %s38_s30, [#allocation3], %s1703_s0, %s1703_s0, %s1704_s23  }
  0x24   :  { %p1693_p0 = pnand %p1692_p13, %p1686_p10 }
  0x26   :  { %1696 = shalt.err (!%p1693_p0)
}
  0x27   :  { %83 = dma.hbm_to_vmem [thread:$0]  %s2255_s11, 8192, %s78_s27, [#allocation5], %s1703_s0, %s1703_s0, %s1704_s23  }
  0x28   :  { %1697 = dma.done.wait [#allocation3], 8192  }
  0x29   :  { %1698 = vsyncadd [#allocation3], 4294959104 }
  0x2a   :  { %1699 = dma.done.wait [#allocation5], 12288  }
  0x2b   :  { %1700 = vsyncadd [#allocation5], 4294955008  ;;  %v143_v0 = vld [vmem:[#allocation2 + $0xf8] sm:$0xff]  ;;  %v142_v1 = vld [vmem:[#allocation2 + $0xf0] sm:$0xff]  ;;  %s2277_s30 = sld [smem:[#allocation9_spill]]  ;;  %vm1707_vm0 = vmmov 0  }
  0x2c   :  { %v141_v2 = vld [vmem:[#allocation2 + $0xe8] sm:$0xff]  ;;  %207 = vmatprep.subr.mxu0 %v143_v0  ;;  %v140_v3 = vld [vmem:[#allocation2 + $0xe0] sm:$0xff]  ;;  %v139_v4 = vld [vmem:[#allocation2 + $0xd8] sm:$0xff]  ;;  %s2278_s23 = sld [smem:[#allocation12_spill]]  ;;  %vm546_vm1 = vcmask 64512   ;;  %vm1217_vm2 = vcmask 523264  }
  0x2d   :  { %208 = vmatpush1.msra.mxu0 %v142_v1  ;;  %v138_v5 = vld [vmem:[#allocation2 + $0xd0] sm:$0xff]  ;;  %v137_v6 = vld [vmem:[#allocation2 + $0xc8] sm:$0xff]  ;;  %v136_v7 = vld [vmem:[#allocation2 + $0xc0] sm:$0xff]  ;;  %s2279_s1 = sld [smem:[#allocation11_spill]]  ;;  %vm1311_vm3 = vcmask 261120  }
  0x2e   :  { %209 = vmatprep.subr.mxu0 %v141_v2  ;;  %v135_v8 = vld [vmem:[#allocation2 + $0xb8] sm:$0xff]  ;;  %v134_v9 = vld [vmem:[#allocation2 + $0xb0] sm:$0xff]  ;;  %v133_v10 = vld [vmem:[#allocation2 + $0xa8] sm:$0xff]  ;;  %s2280_s24 = sld [smem:[#allocation14_spill]] }
  0x2f   :  { %210 = vmatpush1.msra.mxu0 %v140_v3  ;;  %v132_v11 = vld [vmem:[#allocation2 + $0xa0] sm:$0xff]  ;;  %v131_v12 = vld [vmem:[#allocation2 + $0x98] sm:$0xff]  ;;  %v130_v13 = vld [vmem:[#allocation2 + $0x90] sm:$0xff]  ;;  %s2281_s6 = sld [smem:[#allocation13_spill]] }
  0x30   :  { %211 = vmatprep.subr.mxu0 %v139_v4  ;;  %v129_v14 = vld [vmem:[#allocation2 + $0x88] sm:$0xff]  ;;  %v128_v15 = vld [vmem:[#allocation2 + $0x80] sm:$0xff]  ;;  %v127_v16 = vld [vmem:[#allocation2 + $0x78] sm:$0xff]  ;;  %s2282_s27 = sld [smem:[#allocation15_spill]] }
  0x31   :  { %212 = vmatpush1.msra.mxu0 %v138_v5  ;;  %v126_v17 = vld [vmem:[#allocation2 + $0x70] sm:$0xff]  ;;  %v125_v18 = vld [vmem:[#allocation2 + $0x68] sm:$0xff]  ;;  %v124_v19 = vld [vmem:[#allocation2 + $0x60] sm:$0xff] }
  0x32   :  { %213 = vmatprep.subr.mxu0 %v137_v6  ;;  %v123_v20 = vld [vmem:[#allocation2 + $0x58] sm:$0xff]  ;;  %v122_v21 = vld [vmem:[#allocation2 + $0x50] sm:$0xff]  ;;  %v121_v22 = vld [vmem:[#allocation2 + $0x48] sm:$0xff] }
  0x33   :  { %214 = vmatpush1.msra.mxu0 %v136_v7  ;;  %v120_v23 = vld [vmem:[#allocation2 + $0x40] sm:$0xff]  ;;  %v351_v25 = vld [vmem:[%s2278_s23 + $0xf8] sm:$0xff]  ;;  %v350_v29 = vld [vmem:[%s2278_s23 + $0xf0] sm:$0xff] }
  0x34   :  { %215 = vmatprep.subr.mxu0 %v135_v8  ;;  %v1835_v24 = vld.sshfl [vmem:[%s2277_s30] sm:$0x33 pattern:$0x76325410]  ;;  %v119_v26 = vld [vmem:[#allocation2 + $0x38] sm:$0xff]  ;;  %1421 = vmatprep.subr.mxu1 %v351_v25  ;;  %v118_v30 = vld [vmem:[#allocation2 + $0x30] sm:$0xff] }
  0x35   :  { %216 = vmatpush1.msra.mxu0 %v134_v9  ;;  %v204_v27 = vcombine.high %v1835_v24, %v1835_v24  ;;  %v335_v28 = vld [vmem:[%s2278_s23 + $0x78] sm:$0xff]  ;;  %v334_v31 = vld [vmem:[%s2278_s23 + $0x70] sm:$0xff]  ;;  %v117_v32 = vld [vmem:[#allocation2 + $0x28] sm:$0xff] }
  0x36   :  { %217 = vmatprep.subr.mxu0 %v133_v10  ;;  %1422 = vmatpush3.msra.mxu1 %v335_v28  ;;  %v349_v33 = vld [vmem:[%s2278_s23 + $0xe8] sm:$0xff]  ;;  %v116_v34 = vld [vmem:[#allocation2 + $0x20] sm:$0xff]  ;;  %v115_v36 = vld [vmem:[#allocation2 + $0x18] sm:$0xff] }
  0x37   :  { %218 = vmatpush1.msra.mxu0 %v132_v11  ;;  %271 = vmatprep.mubr.f32.mxu0 %v204_v27  ;;  %v333_v35 = vld [vmem:[%s2278_s23 + $0x68] sm:$0xff]  ;;  %v348_v37 = vld [vmem:[%s2278_s23 + $0xe0] sm:$0xff]  ;;  %v114_v38 = vld [vmem:[#allocation2 + $0x10] sm:$0xff] }
  0x38   :  { %219 = vmatprep.subr.mxu0 %v131_v12  ;;  %1423 = vmatprep.subr.mxu1 %v350_v29  ;;  %v332_v39 = vld [vmem:[%s2278_s23 + $0x60] sm:$0xff]  ;;  %v113_v40 = vld [vmem:[#allocation2 + $0x8] sm:$0xff]  ;;  %v347_v41 = vld [vmem:[%s2278_s23 + $0xd8] sm:$0xff] }
  0x39   :  { %220 = vmatpush1.msra.mxu0 %v130_v13  ;;  %1424 = vmatpush3.msra.mxu1 %v334_v31  ;;  %v112_v42 = vld [vmem:[#allocation2] sm:$0xff]  ;;  %v331_v43 = vld [vmem:[%s2278_s23 + $0x58] sm:$0xff]  ;;  %v346_v45 = vld [vmem:[%s2278_s23 + $0xd0] sm:$0xff] }
  0x3a   :  { %221 = vmatprep.subr.mxu0 %v129_v14  ;;  %1425 = vmatprep.subr.mxu1 %v349_v33  ;;  %v175_v44 = vld [vmem:[#allocation2 + $0x1f8] sm:$0xff]  ;;  %v174_v46 = vld [vmem:[#allocation2 + $0x1f0] sm:$0xff]  ;;  %v173_v48 = vld [vmem:[#allocation2 + $0x1e8] sm:$0xff] }
  0x3b   :  { %222 = vmatpush1.msra.mxu0 %v128_v15  ;;  %1426 = vmatpush3.msra.mxu1 %v333_v35  ;;  %v330_v47 = vld [vmem:[%s2278_s23 + $0x50] sm:$0xff]  ;;  %v345_v49 = vld [vmem:[%s2278_s23 + $0xc8] sm:$0xff]  ;;  %v172_v50 = vld [vmem:[#allocation2 + $0x1e0] sm:$0xff]  ;;  %v178_v35 = vlaneseq }
  0x3c   :  { %223 = vmatprep.subr.mxu0 %v127_v16  ;;  %1427 = vmatprep.subr.mxu1 %v348_v37  ;;  %v329_v51 = vld [vmem:[%s2278_s23 + $0x48] sm:$0xff]  ;;  %v171_v52 = vld [vmem:[#allocation2 + $0x1d8] sm:$0xff]  ;;  %v344_v53 = vld [vmem:[%s2278_s23 + $0xc0] sm:$0xff] }
  0x3d   :  { %224 = vmatpush1.msra.mxu0 %v126_v17  ;;  %1428 = vmatpush3.msra.mxu1 %v332_v39  ;;  %v170_v54 = vld [vmem:[#allocation2 + $0x1d0] sm:$0xff]  ;;  %v328_v55 = vld [vmem:[%s2278_s23 + $0x40] sm:$0xff]  ;;  %v169_v56 = vld [vmem:[#allocation2 + $0x1c8] sm:$0xff] }
  0x3e   :  { %225 = vmatprep.subr.mxu0 %v125_v18  ;;  %1429 = vmatprep.subr.mxu1 %v347_v41  ;;  %v343_v57 = vld [vmem:[%s2278_s23 + $0xb8] sm:$0xff]  ;;  %v168_v58 = vld [vmem:[#allocation2 + $0x1c0] sm:$0xff]  ;;  %v342_v61 = vld [vmem:[%s2278_s23 + $0xb0] sm:$0xff] }
  0x3f   :  { %226 = vmatpush1.msra.mxu0 %v124_v19  ;;  %1430 = vmatpush3.msra.mxu1 %v331_v43  ;;  %v327_v59 = vld [vmem:[%s2278_s23 + $0x38] sm:$0xff]  ;;  %v166_v62 = vld [vmem:[#allocation2 + $0x1b0] sm:$0xff]  ;;  %v165_v0 = vld [vmem:[#allocation2 + $0x1a8] sm:$0xff] }
  0x40   :  { %227 = vmatprep.subr.mxu0 %v123_v20  ;;  %1431 = vmatprep.subr.mxu1 %v346_v45  ;;  %v167_v60 = vld [vmem:[#allocation2 + $0x1b8] sm:$0xff]  ;;  %v326_v63 = vld [vmem:[%s2278_s23 + $0x30] sm:$0xff]  ;;  %v164_v1 = vld [vmem:[#allocation2 + $0x1a0] sm:$0xff] }
  0x41   :  { %228 = vmatpush1.msra.mxu0 %v122_v21  ;;  %1432 = vmatpush3.msra.mxu1 %v330_v47  ;;  %v163_v2 = vld [vmem:[#allocation2 + $0x198] sm:$0xff]  ;;  %v162_v3 = vld [vmem:[#allocation2 + $0x190] sm:$0xff]  ;;  %v161_v4 = vld [vmem:[#allocation2 + $0x188] sm:$0xff] }
  0x42   :  { %229 = vmatprep.subr.mxu0 %v121_v22  ;;  %1433 = vmatprep.subr.mxu1 %v345_v49  ;;  %v160_v5 = vld [vmem:[#allocation2 + $0x180] sm:$0xff]  ;;  %v159_v6 = vld [vmem:[#allocation2 + $0x178] sm:$0xff]  ;;  %v158_v7 = vld [vmem:[#allocation2 + $0x170] sm:$0xff] }
  0x43   :  { %230 = vmatpush1.msra.mxu0 %v120_v23  ;;  %1434 = vmatpush3.msra.mxu1 %v329_v51  ;;  %v157_v8 = vld [vmem:[#allocation2 + $0x168] sm:$0xff]  ;;  %v156_v9 = vld [vmem:[#allocation2 + $0x160] sm:$0xff]  ;;  %v155_v10 = vld [vmem:[#allocation2 + $0x158] sm:$0xff] }
  0x44   :  { %231 = vmatprep.subr.mxu0 %v119_v26  ;;  %1435 = vmatprep.subr.mxu1 %v344_v53  ;;  %v154_v11 = vld [vmem:[#allocation2 + $0x150] sm:$0xff]  ;;  %v153_v12 = vld [vmem:[#allocation2 + $0x148] sm:$0xff]  ;;  %v152_v13 = vld [vmem:[#allocation2 + $0x140] sm:$0xff] }
  0x45   :  { %232 = vmatpush1.msra.mxu0 %v118_v30  ;;  %1436 = vmatpush3.msra.mxu1 %v328_v55  ;;  %v151_v14 = vld [vmem:[#allocation2 + $0x138] sm:$0xff]  ;;  %v150_v15 = vld [vmem:[#allocation2 + $0x130] sm:$0xff]  ;;  %v149_v16 = vld [vmem:[#allocation2 + $0x128] sm:$0xff] }
  0x46   :  { %233 = vmatprep.subr.mxu0 %v117_v32  ;;  %1437 = vmatprep.subr.mxu1 %v343_v57  ;;  %v148_v17 = vld [vmem:[#allocation2 + $0x120] sm:$0xff]  ;;  %v147_v18 = vld [vmem:[#allocation2 + $0x118] sm:$0xff]  ;;  %v146_v19 = vld [vmem:[#allocation2 + $0x110] sm:$0xff] }
  0x47   :  { %234 = vmatpush1.msra.mxu0 %v116_v34  ;;  %1438 = vmatpush3.msra.mxu1 %v327_v59  ;;  %v145_v20 = vld [vmem:[#allocation2 + $0x108] sm:$0xff]  ;;  %v144_v21 = vld [vmem:[#allocation2 + $0x100] sm:$0xff]  ;;  %v323_v27 = vld [vmem:[%s2278_s23 + $0x18] sm:$0xff]  ;;  %v1706_v34 = vmov 0.0  }
  0x48   :  { %235 = vmatprep.subr.mxu0 %v115_v36  ;;  %1439 = vmatprep.subr.mxu1 %v342_v61  ;;  %v341_v22 = vld [vmem:[%s2278_s23 + $0xa8] sm:$0xff]  ;;  %v340_v25 = vld [vmem:[%s2278_s23 + $0xa0] sm:$0xff]  ;;  %v338_v28 = vld [vmem:[%s2278_s23 + $0x90] sm:$0xff]  ;;  %v179_v36 = vshrl.u32 %v178_v35, 7 }
  0x49   :  { %236 = vmatpush1.msra.mxu0 %v114_v38  ;;  %1440 = vmatpush3.msra.mxu1 %v326_v63  ;;  %v325_v23 = vld [vmem:[%s2278_s23 + $0x28] sm:$0xff]  ;;  %v324_v26 = vld [vmem:[%s2278_s23 + $0x20] sm:$0xff]  ;;  %v322_v29 = vld [vmem:[%s2278_s23 + $0x10] sm:$0xff] }
  0x4a   :  { %237 = vmatprep.subr.mxu0 %v113_v40  ;;  %1441 = vmatprep.subr.mxu1 %v341_v22  ;;  %v337_v30 = vld [vmem:[%s2278_s23 + $0x88] sm:$0xff]  ;;  %v336_v32 = vld [vmem:[%s2278_s23 + $0x80] sm:$0xff]  ;;  %v1937_v37 = vsub.s32 0, %v179_v36  ;;  %v1942_v39 = vsub.s32 4, %v179_v36  ;;  %v1945_v41 = vsub.s32 1, %v179_v36  ;;  %v1948_v43 = vsub.s32 5, %v179_v36 }
  0x4b   :  { %238 = vmatpush1.msra.mxu0 %v112_v42  ;;  %1442 = vmatpush3.msra.mxu1 %v325_v23  ;;  %v321_v31 = vld [vmem:[%s2278_s23 + $0x8] sm:$0xff]  ;;  %v320_v33 = vld [vmem:[%s2278_s23] sm:$0xff]  ;;  %v1951_v45 = vsub.s32 6, %v179_v36  ;;  %v1954_v47 = vsub.s32 2, %v179_v36 }
  0x4c   :  { %239 = vmatprep.subr.mxu0 %v175_v44  ;;  %1443 = vmatprep.subr.mxu1 %v340_v25  ;;  %v176_v38 = vld [vmem:[%s2279_s1] sm:$0x77] }
  0x4d   :  { %240 = vmatpush2.msra.mxu0 %v174_v46  ;;  %1444 = vmatpush3.msra.mxu1 %v324_v26  ;;  %v181_v40 = vrot.slane %v176_v38, %v1937_v37  ;;  %v185_v42 = vrot.slane %v176_v38, %v1942_v39  ;;  %v283_v46 = vrot.slane %v176_v38, %v1945_v41 }
  0x4e   :  { %241 = vmatprep.subr.mxu0 %v173_v48  ;;  %v287_v49 = vrot.slane %v176_v38, %v1948_v43  ;;  %v303_v55 = vrot.slane %v176_v38, %v1954_v47 }
  0x4f   :  { %242 = vmatpush2.msra.mxu0 %v172_v50  ;;  %v191_v44 = vrot.slane %v181_v40, %v1937_v37  ;;  %v195_v48 = vrot.slane %v185_v42, %v1937_v37  ;;  %v293_v53 = vrot.slane %v283_v46, %v1945_v41 }
  0x50   :  { %243 = vmatprep.subr.mxu0 %v171_v52  ;;  %v307_v52 = vrot.slane %v176_v38, %v1951_v45 }
  0x51   :  { %244 = vmatpush2.msra.mxu0 %v170_v54 }
  0x52   :  { %245 = vmatprep.subr.mxu0 %v169_v56 }
  0x53   :  { %246 = vmatpush2.msra.mxu0 %v168_v58  ;;  %v297_v58 = vrot.slane %v287_v49, %v1945_v41  ;;  %v660_v49 = vld [vmem:[#allocation4 + $0xe8] sm:$0xff] }
  0x54   :  { %247 = vmatprep.subr.mxu0 %v167_v60  ;;  %v317_v60 = vrot.slane %v307_v52, %v1954_v47  ;;  %v657_v52 = vld [vmem:[#allocation4 + $0xd0] sm:$0xff] }
  0x55   :  { %248 = vmatpush2.msra.mxu0 %v166_v62  ;;  %v313_v62 = vrot.slane %v303_v55, %v1954_v47  ;;  %v654_v55 = vld [vmem:[#allocation4 + $0xb8] sm:$0xff] }
  0x56   :  { %249 = vmatprep.subr.mxu0 %v165_v0 }
  0x57   :  { %250 = vmatpush2.msra.mxu0 %v164_v1 }
  0x58   :  { %251 = vmatprep.subr.mxu0 %v163_v2  ;;  %v453_v2 = vld [vmem:[%s2280_s24 + $0x78] sm:$0xff] }
  0x59   :  { %252 = vmatpush2.msra.mxu0 %v162_v3  ;;  %v452_v3 = vld [vmem:[%s2280_s24 + $0x70] sm:$0xff] }
  0x5a   :  { %253 = vmatprep.subr.mxu0 %v161_v4  ;;  %v451_v4 = vld [vmem:[%s2280_s24 + $0x68] sm:$0xff] }
  0x5b   :  { %254 = vmatpush2.msra.mxu0 %v160_v5  ;;  %v450_v5 = vld [vmem:[%s2280_s24 + $0x60] sm:$0xff] }
  0x5c   :  { %255 = vmatprep.subr.mxu0 %v159_v6  ;;  %v449_v6 = vld [vmem:[%s2280_s24 + $0x58] sm:$0xff] }
  0x5d   :  { %256 = vmatpush2.msra.mxu0 %v158_v7  ;;  %v448_v7 = vld [vmem:[%s2280_s24 + $0x50] sm:$0xff] }
  0x5e   :  { %257 = vmatprep.subr.mxu0 %v157_v8  ;;  %v447_v8 = vld [vmem:[%s2280_s24 + $0x48] sm:$0xff] }
  0x5f   :  { %258 = vmatpush2.msra.mxu0 %v156_v9  ;;  %v446_v9 = vld [vmem:[%s2280_s24 + $0x40] sm:$0xff] }
  0x60   :  { %259 = vmatprep.subr.mxu0 %v155_v10  ;;  %v445_v10 = vld [vmem:[%s2280_s24 + $0x38] sm:$0xff] }
  0x61   :  { %260 = vmatpush2.msra.mxu0 %v154_v11  ;;  %v444_v11 = vld [vmem:[%s2280_s24 + $0x30] sm:$0xff] }
  0x62   :  { %261 = vmatprep.subr.mxu0 %v153_v12  ;;  %v443_v12 = vld [vmem:[%s2280_s24 + $0x28] sm:$0xff] }
  0x63   :  { %262 = vmatpush2.msra.mxu0 %v152_v13  ;;  %v442_v13 = vld [vmem:[%s2280_s24 + $0x20] sm:$0xff] }
  0x64   :  { %263 = vmatprep.subr.mxu0 %v151_v14  ;;  %v441_v14 = vld [vmem:[%s2280_s24 + $0x18] sm:$0xff] }
  0x65   :  { %264 = vmatpush2.msra.mxu0 %v150_v15  ;;  %v440_v15 = vld [vmem:[%s2280_s24 + $0x10] sm:$0xff] }
  0x66   :  { %265 = vmatprep.subr.mxu0 %v149_v16  ;;  %v439_v16 = vld [vmem:[%s2280_s24 + $0x8] sm:$0xff] }
  0x67   :  { %266 = vmatpush2.msra.mxu0 %v148_v17  ;;  %v438_v17 = vld [vmem:[%s2280_s24] sm:$0xff] }
  0x68   :  { %267 = vmatprep.subr.mxu0 %v147_v18  ;;  %v352_v18 = vld [vmem:[%s2281_s6] sm:$0x7] }
  0x69   :  { %268 = vmatpush2.msra.mxu0 %v146_v19  ;;  %v431_v25 = vrot.slane %v352_v18, %v1945_v41 }
  0x6a   :  { %269 = vmatprep.subr.mxu0 %v145_v20  ;;  %v356_v20 = vrot.slane %v352_v18, %v1937_v37 }
  0x6b   :  { %270 = vmatpush2.msra.mxu0 %v144_v21 }
  0x6c   :  { %272 = vmatmul.mubr.f32.vlgmr.msra.gmra.mxu0 %v1835_v24  ;;  %v339_v24 = vld [vmem:[%s2278_s23 + $0x98] sm:$0xff] }
  0x6d   :  { %1445 = vmatprep.subr.mxu1 %v339_v24  ;;  %v436_v24 = vrot.slane %v352_v18, %v1954_v47  ;;  %v824_v18 = vld [vmem:[#allocation6 + $0xe0] sm:$0xff] }
  0x6e   :  { %1446 = vmatpush3.msra.mxu1 %v323_v27 }
  0x6f   :  { %1447 = vmatprep.subr.mxu1 %v338_v28 }
  0x70   :  { %1448 = vmatpush3.msra.mxu1 %v322_v29  ;;  %v540_v29 = vld [vmem:[%s2251_s7] sm:$0xff] }
  0x71   :  { %1449 = vmatprep.subr.mxu1 %v337_v30  ;;  %v662_v30 = vld [vmem:[#allocation4 + $0xf8] sm:$0xff] }
  0x72   :  { %1450 = vmatpush3.msra.mxu1 %v321_v31  ;;  %v454_v31 = vld [vmem:[%s2282_s27] sm:$0x7] }
  0x73   :  { %1451 = vmatprep.subr.mxu1 %v336_v32  ;;  %v458_v32 = vrot.slane %v454_v31, %v1937_v37  ;;  %v533_v36 = vrot.slane %v454_v31, %v1945_v41  ;;  %v538_v42 = vrot.slane %v454_v31, %v1954_v47  ;;  %v811_v31 = vld [vmem:[#allocation6 + $0x78] sm:$0xff] }
  0x74   :  { %1452 = vmatpush3.msra.mxu1 %v320_v33 }
  0x75   :  { %1508 = vmatprep.subr.mxu1 %v1706_v34 }
 0x12c   :  { %v273_v50 = vpop.f32.mrf.mxu0 }
 0x12d   :  { %v274_v51 = vadd.f32 %v273_v50, %v191_v44  ;;  %v659_v50 = vld [vmem:[#allocation4 + $0xe0] sm:$0xff] }
 0x12e   :  { %v275_v54 = vpop.f32.mrf.mxu0 }
 0x12f   :  { %v278_v56 = vmax.f32 %v274_v51, 0.0  ;;  %v276_v57 = vadd.f32 %v275_v54, %v195_v48  ;;  %v661_v48 = vld [vmem:[#allocation4 + $0xf0] sm:$0xff]  ;;  %v658_v51 = vld [vmem:[#allocation4 + $0xd8] sm:$0xff]  ;;  %v655_v54 = vld [vmem:[#allocation4 + $0xc0] sm:$0xff] }
 0x131   :  { %v279_v59 = vmax.f32 %v276_v57, 0.0  ;;  %v298_v61 = vmul.f32 %v293_v53, %v278_v56  ;;  %v656_v53 = vld [vmem:[#allocation4 + $0xc8] sm:$0xff]  ;;  %v653_v56 = vld [vmem:[#allocation4 + $0xb0] sm:$0xff] }
 0x132   :  { %v652_v57 = vld [vmem:[#allocation4 + $0xa8] sm:$0xff] }
 0x133   :  { %v299_v63 = vmul.f32 %v297_v58, %v279_v59  ;;  %v318_v1 = vadd.f32 %v313_v62, %v298_v61  ;;  %v651_v58 = vld [vmem:[#allocation4 + $0xa0] sm:$0xff]  ;;  %v650_v59 = vld [vmem:[#allocation4 + $0x98] sm:$0xff]  ;;  %v648_v61 = vld [vmem:[#allocation4 + $0x88] sm:$0xff] }
 0x134   :  { %v647_v62 = vld [vmem:[#allocation4 + $0x80] sm:$0xff] }
 0x135   :  { %v319_v0 = vadd.f32 %v317_v60, %v299_v63  ;;  %v649_v60 = vld [vmem:[#allocation4 + $0x90] sm:$0xff]  ;;  %v646_v63 = vld [vmem:[#allocation4 + $0x78] sm:$0xff] }
 0x137   :  { %421 = vmatprep.mubr.f32.mxu1 %v319_v0  ;;  %v645_v0 = vld [vmem:[#allocation4 + $0x70] sm:$0xff] }
 0x138   :  { %422 = vmatmul.mubr.f32.vlgmr.msra.gmra.mxu1 %v318_v1  ;;  %v644_v1 = vld [vmem:[#allocation4 + $0x68] sm:$0xff] }
 0x139   :  { %1509 = vmatpush3.msra.mxu1 %v453_v2  ;;  %1540 = vmatprep.mubr.msk.f32.mxu1 %vm1707_vm0, %v1706_v34  ;;  %v643_v2 = vld [vmem:[#allocation4 + $0x60] sm:$0xff] }
 0x13a   :  { %1510 = vmatprep.subr.mxu1 %v1706_v34 }
 0x13b   :  { %1511 = vmatpush3.msra.mxu1 %v452_v3  ;;  %v642_v3 = vld [vmem:[#allocation4 + $0x58] sm:$0xff] }
 0x13c   :  { %1512 = vmatprep.subr.mxu1 %v1706_v34 }
 0x13d   :  { %1513 = vmatpush3.msra.mxu1 %v451_v4  ;;  %v641_v4 = vld [vmem:[#allocation4 + $0x50] sm:$0xff] }
 0x13e   :  { %1514 = vmatprep.subr.mxu1 %v1706_v34 }
 0x13f   :  { %1515 = vmatpush3.msra.mxu1 %v450_v5  ;;  %v640_v5 = vld [vmem:[#allocation4 + $0x48] sm:$0xff] }
 0x140   :  { %1516 = vmatprep.subr.mxu1 %v1706_v34 }
 0x141   :  { %1517 = vmatpush3.msra.mxu1 %v449_v6  ;;  %v639_v6 = vld [vmem:[#allocation4 + $0x40] sm:$0xff] }
 0x142   :  { %1518 = vmatprep.subr.mxu1 %v1706_v34 }
 0x143   :  { %1519 = vmatpush3.msra.mxu1 %v448_v7  ;;  %v638_v7 = vld [vmem:[#allocation4 + $0x38] sm:$0xff] }
 0x144   :  { %1520 = vmatprep.subr.mxu1 %v1706_v34 }
 0x145   :  { %1521 = vmatpush3.msra.mxu1 %v447_v8  ;;  %v637_v8 = vld [vmem:[#allocation4 + $0x30] sm:$0xff] }
 0x146   :  { %1522 = vmatprep.subr.mxu1 %v1706_v34 }
 0x147   :  { %1523 = vmatpush3.msra.mxu1 %v446_v9  ;;  %v636_v9 = vld [vmem:[#allocation4 + $0x28] sm:$0xff] }
 0x148   :  { %1524 = vmatprep.subr.mxu1 %v1706_v34 }
 0x149   :  { %1525 = vmatpush3.msra.mxu1 %v445_v10  ;;  %v635_v10 = vld [vmem:[#allocation4 + $0x20] sm:$0xff] }
 0x14a   :  { %1526 = vmatprep.subr.mxu1 %v1706_v34 }
 0x14b   :  { %1527 = vmatpush3.msra.mxu1 %v444_v11  ;;  %v634_v11 = vld [vmem:[#allocation4 + $0x18] sm:$0xff] }
 0x14c   :  { %1528 = vmatprep.subr.mxu1 %v1706_v34 }
 0x14d   :  { %1529 = vmatpush3.msra.mxu1 %v443_v12  ;;  %v633_v12 = vld [vmem:[#allocation4 + $0x10] sm:$0xff] }
 0x14e   :  { %1530 = vmatprep.subr.mxu1 %v1706_v34 }
 0x14f   :  { %1531 = vmatpush3.msra.mxu1 %v442_v13  ;;  %v632_v13 = vld [vmem:[#allocation4 + $0x8] sm:$0xff] }
 0x150   :  { %1532 = vmatprep.subr.mxu1 %v1706_v34 }
 0x151   :  { %1533 = vmatpush3.msra.mxu1 %v441_v14  ;;  %v631_v14 = vld [vmem:[#allocation4] sm:$0xff] }
 0x152   :  { %1534 = vmatprep.subr.mxu1 %v1706_v34 }
 0x153   :  { %1535 = vmatpush3.msra.mxu1 %v440_v15  ;;  %v827_v15 = vld [vmem:[#allocation6 + $0xf8] sm:$0xff] }
 0x154   :  { %1536 = vmatprep.subr.mxu1 %v1706_v34  ;;  %880 = vmatprep.subr.mxu0 %v827_v15 }
 0x155   :  { %1537 = vmatpush3.msra.mxu1 %v439_v16  ;;  %v826_v16 = vld [vmem:[#allocation6 + $0xf0] sm:$0xff] }
 0x156   :  { %1538 = vmatprep.subr.mxu1 %v1706_v34  ;;  %881 = vmatpush1.msra.mxu0 %v826_v16 }
 0x157   :  { %1539 = vmatpush3.msra.mxu1 %v438_v17  ;;  %v825_v17 = vld [vmem:[#allocation6 + $0xe8] sm:$0xff] }
 0x158   :  { %1543 = vmatprep.subr.mxu1 %v1706_v34  ;;  %882 = vmatprep.subr.mxu0 %v825_v17 }
 0x159   :  { %883 = vmatpush1.msra.mxu0 %v824_v18 }
 0x1f8   :  { %v1453_v19 = vpop.f32.mrf.mxu1 }
 0x1fa   :  { %v1454_v21 = vpop.f32.mrf.mxu1 }
 0x1fb   :  { %v1455_v22 = vadd.f32 %v1454_v21, %v1453_v19  ;;  %v823_v19 = vld [vmem:[#allocation6 + $0xd8] sm:$0xff]  ;;  %v821_v21 = vld [vmem:[#allocation6 + $0xc8] sm:$0xff] }
 0x1fc   :  { %884 = vmatprep.subr.mxu0 %v823_v19 }
 0x1fd   :  { %v424_v23 = vadd.f32 %v1455_v22, %v356_v20  ;;  %v822_v20 = vld [vmem:[#allocation6 + $0xd0] sm:$0xff]  ;;  %v820_v22 = vld [vmem:[#allocation6 + $0xc0] sm:$0xff] }
 0x1fe   :  { %885 = vmatpush1.msra.mxu0 %v822_v20 }
 0x1ff   :  { %v427_v26 = vmax.f32 %v424_v23, 0.0  ;;  %v819_v23 = vld [vmem:[#allocation6 + $0xb8] sm:$0xff]  ;;  %886 = vmatprep.subr.mxu0 %v821_v21  ;;  %v1015_v21 = vld [vmem:[%s2257_s13] sm:$0xff] }
 0x200   :  { %887 = vmatpush1.msra.mxu0 %v820_v22  ;;  %v1117_v22 = vld [vmem:[%s2259_s15 + $0x78] sm:$0xff] }
 0x201   :  { %v432_v27 = vmul.f32 %v431_v25, %v427_v26  ;;  %v818_v25 = vld [vmem:[#allocation6 + $0xb0] sm:$0xff]  ;;  %v817_v26 = vld [vmem:[#allocation6 + $0xa8] sm:$0xff]  ;;  %888 = vmatprep.subr.mxu0 %v819_v23 }
 0x202   :  { %889 = vmatpush1.msra.mxu0 %v818_v25  ;;  %v1116_v23 = vld [vmem:[%s2259_s15 + $0x70] sm:$0xff]  ;;  %v1115_v25 = vld [vmem:[%s2259_s15 + $0x68] sm:$0xff] }
 0x203   :  { %v437_v28 = vadd.f32 %v436_v24, %v432_v27  ;;  %v816_v24 = vld [vmem:[#allocation6 + $0xa0] sm:$0xff]  ;;  %v815_v27 = vld [vmem:[#allocation6 + $0x98] sm:$0xff]  ;;  %890 = vmatprep.subr.mxu0 %v817_v26 }
 0x204   :  { %891 = vmatpush1.msra.mxu0 %v816_v24  ;;  %v1113_v26 = vld [vmem:[%s2259_s15 + $0x58] sm:$0xff]  ;;  %v1112_v24 = vld [vmem:[%s2259_s15 + $0x50] sm:$0xff] }
 0x205   :  { %1541 = vmatmul.mubr.f32.vlgmr.msra.gmra.mxu1 %v437_v28  ;;  %v814_v28 = vld [vmem:[#allocation6 + $0x90] sm:$0xff]  ;;  %892 = vmatprep.subr.mxu0 %v815_v27  ;;  %v1111_v27 = vld [vmem:[%s2259_s15 + $0x48] sm:$0xff] }
 0x206   :  { %1545 = vmatprep.mubr.msk.f32.mxu1 %vm1707_vm0, %v1706_v34  ;;  %1544 = vmatpush3.msra.mxu1 %v540_v29  ;;  %v813_v29 = vld [vmem:[#allocation6 + $0x88] sm:$0xff] }
 0x207   :  { %683 = vmatprep.subr.mxu1 %v662_v30  ;;  %v812_v30 = vld [vmem:[#allocation6 + $0x80] sm:$0xff]  ;;  %893 = vmatpush1.msra.mxu0 %v814_v28 }
 0x208   :  { %894 = vmatprep.subr.mxu0 %v813_v29  ;;  %v1110_v28 = vld [vmem:[%s2259_s15 + $0x40] sm:$0xff]  ;;  %v1109_v29 = vld [vmem:[%s2259_s15 + $0x38] sm:$0xff] }
 0x209   :  { %895 = vmatpush1.msra.mxu0 %v812_v30  ;;  %v839_v30 = vld [vmem:[#allocation6 + $0x158] sm:$0xff] }
 0x20a   :  { %896 = vmatprep.subr.mxu0 %v811_v31  ;;  %v1108_v31 = vld [vmem:[%s2259_s15 + $0x30] sm:$0xff] }
 0x2c5   :  { %v525_v33 = vpop.f32.mrf.mxu1 }
 0x2c6   :  { %v526_v35 = vadd.f32 %v525_v33, %v458_v32  ;;  %v810_v32 = vld [vmem:[#allocation6 + $0x70] sm:$0xff]  ;;  %v809_v33 = vld [vmem:[#allocation6 + $0x68] sm:$0xff] }
 0x2c7   :  { %v1542_v38 = vpop.f32.mrf.mxu1  ;;  %897 = vmatpush1.msra.mxu0 %v810_v32  ;;  %v838_v32 = vld [vmem:[#allocation6 + $0x150] sm:$0xff] }
 0x2c8   :  { %v529_v40 = vmax.f32 %v526_v35, 0.0  ;;  %v808_v35 = vld [vmem:[#allocation6 + $0x60] sm:$0xff]  ;;  %898 = vmatprep.subr.mxu0 %v809_v33  ;;  %v806_v38 = vld [vmem:[#allocation6 + $0x50] sm:$0xff]  ;;  %v837_v33 = vld [vmem:[#allocation6 + $0x148] sm:$0xff] }
 0x2c9   :  { %899 = vmatpush1.msra.mxu0 %v808_v35  ;;  %v1107_v35 = vld [vmem:[%s2259_s15 + $0x28] sm:$0xff] }
 0x2ca   :  { %v534_v44 = vmul.f32 %v533_v36, %v529_v40  ;;  %v807_v36 = vld [vmem:[#allocation6 + $0x58] sm:$0xff]  ;;  %v805_v40 = vld [vmem:[#allocation6 + $0x48] sm:$0xff] }
 0x2cb   :  { %900 = vmatprep.subr.mxu0 %v807_v36  ;;  %v836_v36 = vld [vmem:[#allocation6 + $0x140] sm:$0xff] }
 0x2cc   :  { %v2047_v46 = vadd.f32 %v538_v42, %v534_v44  ;;  %v804_v42 = vld [vmem:[#allocation6 + $0x40] sm:$0xff]  ;;  %901 = vmatpush1.msra.mxu0 %v806_v38  ;;  %v803_v44 = vld [vmem:[#allocation6 + $0x38] sm:$0xff] }
 0x2cd   :  { %902 = vmatprep.subr.mxu0 %v805_v40  ;;  %v835_v38 = vld [vmem:[#allocation6 + $0x138] sm:$0xff]  ;;  %v1106_v40 = vld [vmem:[%s2259_s15 + $0x20] sm:$0xff] }
 0x2ce   :  { %1546 = vmatmul.mubr.msk.f32.vlgmr.msra.gmra.mxu1 %vm546_vm1, %v2047_v46  ;;  %903 = vmatpush1.msra.mxu0 %v804_v42  ;;  %v834_v42 = vld [vmem:[#allocation6 + $0x130] sm:$0xff] }
 0x2cf   :  { %684 = vmatpush1.msra.mxu1 %v661_v48  ;;  %747 = vmatprep.mubr.f32.mxu1 %v1706_v34  ;;  %v802_v48 = vld [vmem:[#allocation6 + $0x30] sm:$0xff] }
 0x2d0   :  { %685 = vmatprep.subr.mxu1 %v660_v49  ;;  %v801_v49 = vld [vmem:[#allocation6 + $0x28] sm:$0xff]  ;;  %904 = vmatprep.subr.mxu0 %v803_v44 }
 0x2d1   :  { %686 = vmatpush1.msra.mxu1 %v659_v50  ;;  %v800_v50 = vld [vmem:[#allocation6 + $0x20] sm:$0xff]  ;;  %905 = vmatpush1.msra.mxu0 %v802_v48  ;;  %v833_v44 = vld [vmem:[#allocation6 + $0x128] sm:$0xff]  ;;  %v1105_v48 = vld [vmem:[%s2259_s15 + $0x18] sm:$0xff] }
 0x2d2   :  { %687 = vmatprep.subr.mxu1 %v658_v51  ;;  %v799_v51 = vld [vmem:[#allocation6 + $0x18] sm:$0xff]  ;;  %906 = vmatprep.subr.mxu0 %v801_v49  ;;  %v832_v49 = vld [vmem:[#allocation6 + $0x120] sm:$0xff] }
 0x2d3   :  { %688 = vmatpush1.msra.mxu1 %v657_v52  ;;  %v798_v52 = vld [vmem:[#allocation6 + $0x10] sm:$0xff]  ;;  %907 = vmatpush1.msra.mxu0 %v800_v50  ;;  %v831_v50 = vld [vmem:[#allocation6 + $0x118] sm:$0xff] }
 0x2d4   :  { %689 = vmatprep.subr.mxu1 %v656_v53  ;;  %v797_v53 = vld [vmem:[#allocation6 + $0x8] sm:$0xff]  ;;  %908 = vmatprep.subr.mxu0 %v799_v51  ;;  %v1104_v51 = vld [vmem:[%s2259_s15 + $0x10] sm:$0xff] }
 0x2d5   :  { %690 = vmatpush1.msra.mxu1 %v655_v54  ;;  %v796_v54 = vld [vmem:[#allocation6] sm:$0xff]  ;;  %909 = vmatpush1.msra.mxu0 %v798_v52  ;;  %v830_v52 = vld [vmem:[#allocation6 + $0x110] sm:$0xff] }
 0x2d6   :  { %691 = vmatprep.subr.mxu1 %v654_v55  ;;  %v859_v55 = vld [vmem:[#allocation6 + $0x1f8] sm:$0xff]  ;;  %910 = vmatprep.subr.mxu0 %v797_v53  ;;  %v829_v53 = vld [vmem:[#allocation6 + $0x108] sm:$0xff] }
 0x2d7   :  { %692 = vmatpush1.msra.mxu1 %v653_v56  ;;  %v858_v56 = vld [vmem:[#allocation6 + $0x1f0] sm:$0xff]  ;;  %911 = vmatpush1.msra.mxu0 %v796_v54  ;;  %v1103_v54 = vld [vmem:[%s2259_s15 + $0x8] sm:$0xff] }
 0x2d8   :  { %693 = vmatprep.subr.mxu1 %v652_v57  ;;  %v857_v57 = vld [vmem:[#allocation6 + $0x1e8] sm:$0xff]  ;;  %912 = vmatprep.subr.mxu0 %v859_v55  ;;  %v828_v55 = vld [vmem:[#allocation6 + $0x100] sm:$0xff] }
 0x2d9   :  { %694 = vmatpush1.msra.mxu1 %v651_v58  ;;  %v856_v58 = vld [vmem:[#allocation6 + $0x1e0] sm:$0xff]  ;;  %913 = vmatpush2.msra.mxu0 %v858_v56 }
 0x2da   :  { %695 = vmatprep.subr.mxu1 %v650_v59  ;;  %v855_v59 = vld [vmem:[#allocation6 + $0x1d8] sm:$0xff]  ;;  %914 = vmatprep.subr.mxu0 %v857_v57  ;;  %v1102_v56 = vld [vmem:[%s2259_s15] sm:$0xff] }
 0x2db   :  { %696 = vmatpush1.msra.mxu1 %v649_v60  ;;  %v854_v60 = vld [vmem:[#allocation6 + $0x1d0] sm:$0xff]  ;;  %915 = vmatpush2.msra.mxu0 %v856_v58  ;;  %v663_v57 = vld [vmem:[%s2254_s10] sm:$0x77] }
 0x2dc   :  { %697 = vmatprep.subr.mxu1 %v648_v61  ;;  %v853_v61 = vld [vmem:[#allocation6 + $0x1c8] sm:$0xff]  ;;  %916 = vmatprep.subr.mxu0 %v855_v59  ;;  %v668_v58 = vrot.slane %v663_v57, %v1937_v37  ;;  %v672_v59 = vrot.slane %v663_v57, %v1942_v39 }
 0x2dd   :  { %698 = vmatpush1.msra.mxu1 %v647_v62  ;;  %v852_v62 = vld [vmem:[#allocation6 + $0x1c0] sm:$0xff]  ;;  %917 = vmatpush2.msra.mxu0 %v854_v60 }
 0x2de   :  { %699 = vmatprep.subr.mxu1 %v646_v63  ;;  %v851_v63 = vld [vmem:[#allocation6 + $0x1b8] sm:$0xff]  ;;  %918 = vmatprep.subr.mxu0 %v853_v61  ;;  %v678_v60 = vrot.slane %v668_v58, %v1937_v37  ;;  %v759_v61 = vrot.slane %v663_v57, %v1945_v41 }
 0x2df   :  { %700 = vmatpush1.msra.mxu1 %v645_v0  ;;  %v850_v0 = vld [vmem:[#allocation6 + $0x1b0] sm:$0xff]  ;;  %919 = vmatpush2.msra.mxu0 %v852_v62  ;;  %v1016_v62 = vld [vmem:[%s2258_s14] sm:$0x7] }
 0x2e0   :  { %701 = vmatprep.subr.mxu1 %v644_v1  ;;  %v849_v1 = vld [vmem:[#allocation6 + $0x1a8] sm:$0xff]  ;;  %920 = vmatprep.subr.mxu0 %v851_v63  ;;  %v682_v63 = vrot.slane %v672_v59, %v1937_v37 }
 0x2e1   :  { %702 = vmatpush1.msra.mxu1 %v643_v2  ;;  %v848_v2 = vld [vmem:[#allocation6 + $0x1a0] sm:$0xff]  ;;  %921 = vmatpush2.msra.mxu0 %v850_v0  ;;  %v763_v0 = vrot.slane %v663_v57, %v1948_v43 }
 0x2e2   :  { %703 = vmatprep.subr.mxu1 %v642_v3  ;;  %v847_v3 = vld [vmem:[#allocation6 + $0x198] sm:$0xff]  ;;  %922 = vmatprep.subr.mxu0 %v849_v1 }
 0x2e3   :  { %704 = vmatpush1.msra.mxu1 %v641_v4  ;;  %v846_v4 = vld [vmem:[#allocation6 + $0x190] sm:$0xff]  ;;  %923 = vmatpush2.msra.mxu0 %v848_v2 }
 0x2e4   :  { %705 = vmatprep.subr.mxu1 %v640_v5  ;;  %v845_v5 = vld [vmem:[#allocation6 + $0x188] sm:$0xff]  ;;  %924 = vmatprep.subr.mxu0 %v847_v3  ;;  %v1020_v3 = vrot.slane %v1016_v62, %v1937_v37 }
 0x2e5   :  { %706 = vmatpush1.msra.mxu1 %v639_v6  ;;  %v844_v6 = vld [vmem:[#allocation6 + $0x180] sm:$0xff]  ;;  %925 = vmatpush2.msra.mxu0 %v846_v4  ;;  %v783_v4 = vrot.slane %v663_v57, %v1951_v45 }
 0x2e6   :  { %707 = vmatprep.subr.mxu1 %v638_v7  ;;  %v843_v7 = vld [vmem:[#allocation6 + $0x178] sm:$0xff]  ;;  %926 = vmatprep.subr.mxu0 %v845_v5  ;;  %v769_v5 = vrot.slane %v759_v61, %v1945_v41 }
 0x2e7   :  { %708 = vmatpush1.msra.mxu1 %v637_v8  ;;  %v842_v8 = vld [vmem:[#allocation6 + $0x170] sm:$0xff]  ;;  %927 = vmatpush2.msra.mxu0 %v844_v6  ;;  %v779_v6 = vrot.slane %v663_v57, %v1954_v47 }
 0x2e8   :  { %709 = vmatprep.subr.mxu1 %v636_v9  ;;  %v841_v9 = vld [vmem:[#allocation6 + $0x168] sm:$0xff]  ;;  %928 = vmatprep.subr.mxu0 %v843_v7 }
 0x2e9   :  { %710 = vmatpush1.msra.mxu1 %v635_v10  ;;  %v840_v10 = vld [vmem:[#allocation6 + $0x160] sm:$0xff]  ;;  %929 = vmatpush2.msra.mxu0 %v842_v8 }
 0x2ea   :  { %711 = vmatprep.subr.mxu1 %v634_v11  ;;  %930 = vmatprep.subr.mxu0 %v841_v9  ;;  %v541_v11 = vld [vmem:[%s2252_s8] sm:$0x7] }
 0x2eb   :  { %712 = vmatpush1.msra.mxu1 %v633_v12  ;;  %931 = vmatpush2.msra.mxu0 %v840_v10  ;;  %v545_v12 = vrot.slane %v541_v11, %v1937_v37  ;;  %v624_v15 = vrot.slane %v541_v11, %v1945_v41  ;;  %v629_v18 = vrot.slane %v541_v11, %v1954_v47 }
 0x2ec   :  { %713 = vmatprep.subr.mxu1 %v632_v13  ;;  %932 = vmatprep.subr.mxu0 %v839_v30  ;;  %v773_v10 = vrot.slane %v763_v0, %v1945_v41  ;;  %v1206_v30 = vld [vmem:[%s2261_s17 + $0x10] sm:$0xff] }
 0x2ed   :  { %714 = vmatpush1.msra.mxu1 %v631_v14  ;;  %933 = vmatpush2.msra.mxu0 %v838_v32  ;;  %v1204_v32 = vld [vmem:[%s2261_s17] sm:$0xff] }
 0x2ee   :  { %1548 = vmatprep.subr.mxu1 %v1706_v34  ;;  %934 = vmatprep.subr.mxu0 %v837_v33  ;;  %v860_v33 = vld [vmem:[%s2256_s12] sm:$0x77] }
 0x2ef   :  { %935 = vmatpush2.msra.mxu0 %v836_v36  ;;  %v1118_v36 = vld [vmem:[%s2260_s16] sm:$0x7] }
 0x2f0   :  { %936 = vmatprep.subr.mxu0 %v835_v38  ;;  %v869_v38 = vrot.slane %v860_v33, %v1942_v39  ;;  %v1202_v58 = vrot.slane %v1118_v36, %v1954_v47 }
 0x2f1   :  { %937 = vmatpush2.msra.mxu0 %v834_v42  ;;  %v1122_v42 = vrot.slane %v1118_v36, %v1937_v37 }
 0x2f2   :  { %938 = vmatprep.subr.mxu0 %v833_v44  ;;  %v879_v44 = vrot.slane %v869_v38, %v1937_v37 }
 0x2f3   :  { %939 = vmatpush2.msra.mxu0 %v832_v49 }
 0x2f4   :  { %940 = vmatprep.subr.mxu0 %v831_v50 }
 0x2f5   :  { %941 = vmatpush2.msra.mxu0 %v830_v52  ;;  %v1197_v52 = vrot.slane %v1118_v36, %v1945_v41 }
 0x2f6   :  { %942 = vmatprep.subr.mxu0 %v829_v53 }
 0x2f7   :  { %943 = vmatpush2.msra.mxu0 %v828_v55 }
 0x2f8   :  { %1588 = vmatprep.subr.mxu0 %v1706_v34 }
 0x38e   :  { %v616_v13 = vpop.f32.mrf.mxu1 }
 0x38f   :  { %v617_v14 = vadd.f32 %v616_v13, %v545_v12 }
 0x390   :  { %v1547_v16 = vpop.f32.mrf.mxu1 }
 0x391   :  { %v620_v17 = vmax.f32 %v617_v14, 0.0  ;;  %v1095_v14 = vrot.slane %v1016_v62, %v1945_v41 }
 0x393   :  { %v625_v19 = vmul.f32 %v624_v15, %v620_v17  ;;  %v793_v15 = vrot.slane %v783_v4, %v1954_v47  ;;  %v789_v17 = vrot.slane %v779_v6, %v1954_v47 }
 0x395   :  { %v630_v20 = vadd.f32 %v629_v18, %v625_v19 }
 0x397   :  { %748 = vmatmul.mubr.f32.vlgmr.msra.gmra.mxu1 %v630_v20 }
 0x398   :  { %1549 = vmatpush3.msra.mxu1 %v1015_v21  ;;  %1550 = vmatprep.mubr.msk.f32.mxu1 %vm1707_vm0, %v1706_v34  ;;  %v1100_v21 = vrot.slane %v1016_v62, %v1954_v47 }
 0x399   :  { %1553 = vmatprep.subr.mxu1 %v1706_v34 }
 0x39b   :  { %1551 = vmatmul.mubr.msk.f32.vlgmr.msra.gmra.mxu1 %vm546_vm1, %v2047_v46  ;;  %v1114_v46 = vld [vmem:[%s2259_s15 + $0x60] sm:$0xff] }
 0x39c   :  { %1554 = vmatpush3.msra.mxu1 %v1117_v22  ;;  %1585 = vmatprep.mubr.msk.f32.mxu1 %vm1707_vm0, %v1706_v34 }
 0x39d   :  { %1555 = vmatprep.subr.mxu1 %v1706_v34 }
 0x39e   :  { %1556 = vmatpush3.msra.mxu1 %v1116_v23 }
 0x39f   :  { %1557 = vmatprep.subr.mxu1 %v1706_v34 }
 0x3a0   :  { %1558 = vmatpush3.msra.mxu1 %v1115_v25 }
 0x3a1   :  { %1559 = vmatprep.subr.mxu1 %v1706_v34 }
 0x3a2   :  { %1560 = vmatpush3.msra.mxu1 %v1114_v46  ;;  %v1211_v46 = vld [vmem:[%s2261_s17 + $0x38] sm:$0xff] }
 0x3a3   :  { %1561 = vmatprep.subr.mxu1 %v1706_v34 }
 0x3a4   :  { %1562 = vmatpush3.msra.mxu1 %v1113_v26 }
 0x3a5   :  { %1563 = vmatprep.subr.mxu1 %v1706_v34 }
 0x3a6   :  { %1564 = vmatpush3.msra.mxu1 %v1112_v24  ;;  %v1210_v24 = vld [vmem:[%s2261_s17 + $0x30] sm:$0xff] }
 0x3a7   :  { %1565 = vmatprep.subr.mxu1 %v1706_v34 }
 0x3a8   :  { %1566 = vmatpush3.msra.mxu1 %v1111_v27  ;;  %v1209_v27 = vld [vmem:[%s2261_s17 + $0x28] sm:$0xff] }
 0x3a9   :  { %1567 = vmatprep.subr.mxu1 %v1706_v34 }
 0x3aa   :  { %1568 = vmatpush3.msra.mxu1 %v1110_v28  ;;  %v1208_v28 = vld [vmem:[%s2261_s17 + $0x20] sm:$0xff] }
 0x3ab   :  { %1569 = vmatprep.subr.mxu1 %v1706_v34 }
 0x3ac   :  { %1570 = vmatpush3.msra.mxu1 %v1109_v29  ;;  %v1207_v29 = vld [vmem:[%s2261_s17 + $0x18] sm:$0xff] }
 0x3ad   :  { %1571 = vmatprep.subr.mxu1 %v1706_v34 }
 0x3ae   :  { %1572 = vmatpush3.msra.mxu1 %v1108_v31  ;;  %v1205_v31 = vld [vmem:[%s2261_s17 + $0x8] sm:$0xff] }
 0x3af   :  { %1573 = vmatprep.subr.mxu1 %v1706_v34 }
 0x3b0   :  { %1574 = vmatpush3.msra.mxu1 %v1107_v35  ;;  %v865_v35 = vrot.slane %v860_v33, %v1937_v37 }
 0x3b1   :  { %1575 = vmatprep.subr.mxu1 %v1706_v34 }
 0x3b2   :  { %1576 = vmatpush3.msra.mxu1 %v1106_v40  ;;  %v875_v40 = vrot.slane %v865_v35, %v1937_v37 }
 0x3b3   :  { %1577 = vmatprep.subr.mxu1 %v1706_v34 }
 0x3b4   :  { %1578 = vmatpush3.msra.mxu1 %v1105_v48 }
 0x3b5   :  { %1579 = vmatprep.subr.mxu1 %v1706_v34 }
 0x3b6   :  { %1580 = vmatpush3.msra.mxu1 %v1104_v51 }
 0x3b7   :  { %1581 = vmatprep.subr.mxu1 %v1706_v34 }
 0x3b8   :  { %1582 = vmatpush3.msra.mxu1 %v1103_v54 }
 0x3b9   :  { %1583 = vmatprep.subr.mxu1 %v1706_v34 }
 0x3ba   :  { %1584 = vmatpush3.msra.mxu1 %v1102_v56 }
 0x3bb   :  { %1607 = vmatprep.subr.mxu1 %v1706_v34 }
 0x457   :  { %v749_v1 = vpop.f32.mrf.mxu1 }
 0x458   :  { %v750_v2 = vadd.f32 %v749_v1, %v678_v60  ;;  %v966_v1 = vrot.slane %v860_v33, %v1945_v41 }
 0x459   :  { %v751_v7 = vpop.f32.mrf.mxu1 }
 0x45a   :  { %v754_v8 = vmax.f32 %v750_v2, 0.0  ;;  %v752_v9 = vadd.f32 %v751_v7, %v682_v63  ;;  %v970_v2 = vrot.slane %v860_v33, %v1948_v43  ;;  %v976_v4 = vrot.slane %v966_v1, %v1945_v41  ;;  %v1305_v43 = vld [vmem:[%s2263_s19 + $0x18] sm:$0xff] }
 0x45b   :  { %v1087_v11 = vpop.f32.mrf.mxu1 }
 0x45c   :  { %v755_v12 = vmax.f32 %v752_v9, 0.0  ;;  %v1088_v13 = vadd.f32 %v1087_v11, %v1020_v3  ;;  %v774_v16 = vmul.f32 %v769_v5, %v754_v8  ;;  %v990_v3 = vrot.slane %v860_v33, %v1951_v45  ;;  %v1304_v45 = vld [vmem:[%s2263_s19 + $0x10] sm:$0xff] }
 0x45d   :  { %v1552_v18 = vpop.f32.mrf.mxu1  ;;  %v986_v5 = vrot.slane %v860_v33, %v1954_v47  ;;  %v980_v6 = vrot.slane %v970_v2, %v1945_v41 }
 0x45e   :  { %v775_v19 = vmul.f32 %v773_v10, %v755_v12  ;;  %v1091_v20 = vmax.f32 %v1088_v13, 0.0  ;;  %v794_v25 = vadd.f32 %v789_v17, %v774_v16  ;;  %v1000_v8 = vrot.slane %v990_v3, %v1954_v47  ;;  %v1303_v16 = vld [vmem:[%s2263_s19 + $0x8] sm:$0xff]  ;;  %v1302_v17 = vld [vmem:[%s2263_s19] sm:$0xff] }
 0x45f   :  { %v996_v10 = vrot.slane %v986_v5, %v1954_v47  ;;  %v1212_v18 = vld [vmem:[%s2262_s18] sm:$0x7] }
 0x460   :  { %v1096_v22 = vmul.f32 %v1095_v14, %v1091_v20  ;;  %v795_v23 = vadd.f32 %v793_v15, %v775_v19  ;;  %v1216_v19 = vrot.slane %v1212_v18, %v1937_v37 }
 0x462   :  { %v1101_v26 = vadd.f32 %v1100_v21, %v1096_v22  ;;  %944 = vmatprep.mubr.f32.mxu0 %v795_v23  ;;  %v1295_v22 = vrot.slane %v1212_v18, %v1945_v41 }
 0x463   :  { %945 = vmatmul.mubr.f32.vlgmr.msra.gmra.mxu0 %v794_v25 }
 0x464   :  { %1586 = vmatmul.mubr.f32.vlgmr.msra.gmra.mxu1 %v1101_v26  ;;  %1589 = vmatpush3.msra.mxu0 %v1211_v46  ;;  %v1300_v46 = vrot.slane %v1212_v18, %v1954_v47 }
 0x465   :  { %1590 = vmatprep.subr.mxu0 %v1706_v34  ;;  %1604 = vmatprep.mubr.msk.f32.mxu0 %vm1707_vm0, %v1706_v34 }
 0x466   :  { %1591 = vmatpush3.msra.mxu0 %v1210_v24  ;;  %1615 = vmatprep.mubr.msk.f32.mxu1 %vm1707_vm0, %v1706_v34  ;;  %v1306_v24 = vld [vmem:[%s2264_s20] sm:$0x7] }
 0x467   :  { %1592 = vmatprep.subr.mxu0 %v1706_v34  ;;  %1608 = vmatpush3.msra.mxu1 %v1305_v43  ;;  %v1394_v35 = vrot.slane %v1306_v24, %v1945_v41  ;;  %v1399_v36 = vrot.slane %v1306_v24, %v1954_v47 }
 0x468   :  { %1593 = vmatpush3.msra.mxu0 %v1209_v27  ;;  %1609 = vmatprep.subr.mxu1 %v1706_v34  ;;  %v1310_v27 = vrot.slane %v1306_v24, %v1937_v37 }
 0x469   :  { %1594 = vmatprep.subr.mxu0 %v1706_v34  ;;  %1610 = vmatpush3.msra.mxu1 %v1304_v45 }
 0x46a   :  { %1595 = vmatpush3.msra.mxu0 %v1208_v28  ;;  %1611 = vmatprep.subr.mxu1 %v1706_v34 }
 0x46b   :  { %1596 = vmatprep.subr.mxu0 %v1706_v34  ;;  %1612 = vmatpush3.msra.mxu1 %v1303_v16 }
 0x46c   :  { %1597 = vmatpush3.msra.mxu0 %v1207_v29  ;;  %1613 = vmatprep.subr.mxu1 %v1706_v34 }
 0x46d   :  { %1598 = vmatprep.subr.mxu0 %v1706_v34  ;;  %1614 = vmatpush3.msra.mxu1 %v1302_v17 }
 0x46e   :  { %1599 = vmatpush3.msra.mxu0 %v1206_v30 }
 0x46f   :  { %1600 = vmatprep.subr.mxu0 %v1706_v34 }
 0x470   :  { %1601 = vmatpush3.msra.mxu0 %v1205_v31 }
 0x471   :  { %1602 = vmatprep.subr.mxu0 %v1706_v34 }
 0x472   :  { %1603 = vmatpush3.msra.mxu0 %v1204_v32 }
 0x523   :  { %v946_v48 = vpop.f32.mrf.mxu0 }
 0x524   :  { %v947_v49 = vadd.f32 %v946_v48, %v875_v40  ;;  %v1189_v50 = vpop.f32.mrf.mxu1 }
 0x525   :  { %v1190_v51 = vadd.f32 %v1189_v50, %v1122_v42  ;;  %v948_v53 = vpop.f32.mrf.mxu0 }
 0x526   :  { %v1414_v54 = vmul.f32 -1.442695, %v947_v49  ;;  %v949_v55 = vadd.f32 %v948_v53, %v879_v44  ;;  %v1587_v56 = vpop.f32.mrf.mxu1 }
 0x527   :  { %v1193_v57 = vmax.f32 %v1190_v51, 0.0 }
 0x528   :  { %1625 = vpow2.f32 %v1414_v54  ;;  %v1415_v39 = vmul.f32 -1.442695, %v949_v55 }
 0x529   :  { %v1198_v59 = vmul.f32 %v1197_v52, %v1193_v57 }
 0x52a   :  { %1627 = vpow2.f32 %v1415_v39 }
 0x52b   :  { %v1203_v60 = vadd.f32 %v1202_v58, %v1198_v59 }
 0x52d   :  { %1605 = vmatmul.mubr.msk.f32.vlgmr.msra.gmra.mxu0 %vm1217_vm2, %v1203_v60 }
 0x535   :  { %v1626_v61 = vpop.eup %1625 }
 0x536   :  { %v957_v62 = vadd.f32 1.0, %v1626_v61 }
 0x537   :  { %v1628_v63 = vpop.eup %1627 }
 0x538   :  { %1629 = vrcp.f32 %v957_v62  ;;  %v958_v0 = vadd.f32 1.0, %v1628_v63 }
 0x53a   :  { %1631 = vrcp.f32 %v958_v0 }
 0x545   :  { %v1630_v7 = vpop.eup %1629 }
 0x546   :  { %v981_v9 = vmul.f32 %v1630_v7, %v976_v4 }
 0x547   :  { %v1632_v11 = vpop.eup %1631 }
 0x548   :  { %v982_v12 = vmul.f32 %v1632_v11, %v980_v6  ;;  %v1001_v13 = vadd.f32 %v996_v10, %v981_v9 }
 0x54a   :  { %v1002_v14 = vadd.f32 %v1000_v8, %v982_v12 }
 0x54c   :  { %v1005_v15 = vcombine.low %v1001_v13, %v1002_v14 }
 0x54e   :  { %1416 = vst.sshfl [vmem:[%s2265_s21] sm:$0x33 pattern:$0x76325410] %v1005_v15 }
 0x5ed   :  { %v1287_v20 = vpop.f32.mrf.mxu0 }
 0x5ee   :  { %v1288_v21 = vadd.f32 %v1287_v20, %v1216_v19 }
 0x5ef   :  { %v1606_v23 = vpop.f32.mrf.mxu0 }
 0x5f0   :  { %v1291_v25 = vmax.f32 %v1288_v21, 0.0 }
 0x5f2   :  { %v1296_v34 = vmul.f32 %v1295_v22, %v1291_v25 }
 0x5f4   :  { %v1301_v26 = vadd.f32 %v1300_v46, %v1296_v34 }
 0x5f6   :  { %1616 = vmatmul.mubr.msk.f32.vlgmr.msra.gmra.mxu1 %vm1311_vm3, %v1301_v26 }
 0x6b6   :  { %v1381_v28 = vpop.f32.mrf.mxu1 }
 0x6b7   :  { %v1382_v29 = vadd.f32 %v1381_v28, %v1310_v27 }
 0x6b8   :  { %v1617_v30 = vpop.f32.mrf.mxu1 }
 0x6b9   :  { %v1420_v31 = vmul.f32 -1.442695, %v1382_v29 }
 0x6bb   :  { %1633 = vpow2.f32 %v1420_v31 }
 0x6c8   :  { %v1634_v32 = vpop.eup %1633 }
 0x6c9   :  { %v1388_v33 = vadd.f32 1.0, %v1634_v32 }
 0x6cb   :  { %1635 = vrcp.f32 %v1388_v33 }
 0x6d8   :  { %v1636_v38 = vpop.eup %1635 }
 0x6d9   :  { %v1395_v40 = vmul.f32 %v1636_v38, %v1394_v35 }
 0x6db   :  { %v1400_v42 = vadd.f32 %v1399_v36, %v1395_v40 }
 0x6dd   :  { %1401 = vst [vmem:[%s2266_s22] sm:$0x3] %v1400_v42 }
 0x6de   :  { %1410 = vsyncpa [#allocation3], 1 }
 0x6df   :  { %1411 = vsyncpa [#allocation5], 1 }

</bundles_post_ra>
